<compile_context>
chip_gen: v5e
topology: v5e:2x2
jax: 0.10.0
libtpu: 0.0.40
codegen_flags: <defaults>
</compile_context>

<pallas_src>
import numpy as np
import jax
import jax.numpy as jnp
from jax.experimental import pallas as pl
from jax.experimental.pallas import tpu as pltpu

NC, NDF = 1, 30
C1, C2 = NDF, NDF * 2            # 30, 60
C1P, C2P = 32, 64                # channel padding for lane-friendly slabs
H0, W0 = 10, 3                   # input spatial
H1, W1 = 8, 3                    # after conv1 (3,1)
H2, W2 = 6, 2                    # after conv2 (3,2)
P0, P1, P2 = H0 * W0, H1 * W1, H2 * W2     # 30, 24, 12
K0P = 128                        # padded input slab width (lane-dense K)
SLAB1 = P1 * C1P                 # 768
SLAB2 = P2 * C2P                 # 768
OUTP = 128                       # padded output lane width (real logit = col 0)
EPS = 1e-5
LEAK = 0.2
DEFAULT_TILE_B = 1024            # big tiles amortize ~0.35us per-step overhead
ROW_ALIGN = 16                   # bf16-friendly sublane multiple


def _round_up(x, m):
    return ((x + m - 1) // m) * m


def _leaky(h):
    return jnp.where(h > 0, h, LEAK * h)


# --------------------------------------------------------------------------
# Kernels
# --------------------------------------------------------------------------
def disc_front_kernel(x_ref, m1_ref, m2_ref, h2_ref, stats_ref):
    """conv1 -> LeakyReLU -> conv2; bf16 h2 slab + lane-dense BN partial sums."""
    x = x_ref[...]                                              # (tb, 128) bf16
    h1 = jnp.dot(x, m1_ref[...],
                 preferred_element_type=jnp.float32)            # (tb, SLAB1) f32
    h1 = _leaky(h1)
    h2 = jnp.dot(h1.astype(jnp.bfloat16), m2_ref[...],
                 preferred_element_type=jnp.float32)            # (tb, SLAB2) f32
    h2_ref[...] = h2.astype(jnp.bfloat16)                       # halve HBM traffic

    # Per-slab-column partial sums over the batch tile (f32, from pre-cast h2).
    # Lane-dense (768-wide) output => unmasked full-lane stores; the spatial
    # fold to per-channel stats happens in kernel 2.
    cs1 = jnp.sum(h2, axis=0, keepdims=True)                    # (1, SLAB2)
    cs2 = jnp.sum(h2 * h2, axis=0, keepdims=True)               # (1, SLAB2)
    stats_ref[...] = jnp.concatenate([cs1, cs2], axis=0)[None, :, :]  # (1,2,SLAB2)


def _make_back_kernel(inv_n):
    """Kernel 2 factory; inv_n = 1 / (true_B * P2) is baked in statically."""

    def disc_back_kernel(h2_ref, stats_ref, gamma_ref, beta_ref, m3_ref, out_ref):
        # ---- BatchNorm statistics (redundant tiny per-tile work, no XLA glue) ----
        st = jnp.sum(stats_ref[...], axis=0)                    # (2, SLAB2) f32
        s1 = jnp.sum(st[0:1, :].reshape(P2, C2P), axis=0, keepdims=True)  # (1, C2P)
        s2 = jnp.sum(st[1:2, :].reshape(P2, C2P), axis=0, keepdims=True)  # (1, C2P)
        mean = s1 * inv_n
        var = s2 * inv_n - mean * mean                          # biased (training mode)
        scale_c = gamma_ref[...] * jax.lax.rsqrt(var + EPS)     # (1, C2P)
        offset_c = beta_ref[...] - mean * scale_c               # (1, C2P)
        scale = jnp.tile(scale_c, (1, P2))                      # (1, SLAB2)
        offset = jnp.tile(offset_c, (1, P2))                    # (1, SLAB2)

        # ---- BN affine -> LeakyReLU -> conv3 matmul -> Sigmoid ----
        h = h2_ref[...].astype(jnp.float32) * scale + offset    # (tb, SLAB2)
        h = _leaky(h)
        logit = jnp.dot(h.astype(jnp.bfloat16), m3_ref[...],
                        preferred_element_type=jnp.float32)     # (tb, OUTP)
        sig = pl.reciprocal(1.0 + jnp.exp(-logit), approx=True)  # exp + rcp on EUP
        out_ref[...] = sig.astype(out_ref.dtype)                # bf16 writeback

    return disc_back_kernel


# --------------------------------------------------------------------------
# Host-side lowering of the conv weights to dense operators
# --------------------------------------------------------------------------
def build_dense_operators(w1, w2, w3):
    """Lower the three Conv2d weights (PyTorch OIHW layout) to slab matmuls.

    Slab column index = (h*W + w) * Cpad + c   (spatial-major, channel-minor).
    """
    w1 = np.asarray(w1, np.float32)   # (30, 1, 3, 1)
    w2 = np.asarray(w2, np.float32)   # (60, 30, 3, 2)
    w3 = np.asarray(w3, np.float32)   # (1, 60, 6, 2)

    # Layer 1: Conv2d(1, 30, (3,1)).  Input slab padded from 30 to 128 lanes.
    M1 = np.zeros((K0P, SLAB1), np.float32)
    for oh in range(H1):
        for ow in range(W1):
            out0 = (oh * W1 + ow) * C1P
            for kh in range(3):
                in_col = (oh + kh) * W0 + ow          # C0 == 1
                M1[in_col, out0:out0 + C1] = w1[:, 0, kh, 0]

    # Layer 2: Conv2d(30, 60, (3,2)).
    M2 = np.zeros((SLAB1, SLAB2), np.float32)
    for oh in range(H2):
        for ow in range(W2):
            out0 = (oh * W2 + ow) * C2P
            for kh in range(3):
                for kw in range(2):
                    in0 = ((oh + kh) * W1 + (ow + kw)) * C1P
                    M2[in0:in0 + C1, out0:out0 + C2] = w2[:, :, kh, kw].T

    # Layer 3: Conv2d(60, 1, (6,2)) -> single (1,1) output, padded to 128 cols.
    M3 = np.zeros((SLAB2, OUTP), np.float32)
    for kh in range(6):
        for kw in range(2):
            in0 = (kh * W2 + kw) * C2P
            M3[in0:in0 + C2, 0] = w3[0, :, kh, kw]

    return M1, M2, M3


def init_params(key):
    ks = jax.random.split(key, 5)
    w1 = 0.1 * jax.random.normal(ks[0], (C1, NC, 3, 1), jnp.float32)
    w2 = 0.1 * jax.random.normal(ks[1], (C2, C1, 3, 2), jnp.float32)
    w3 = 0.1 * jax.random.normal(ks[2], (NC, C2, 6, 2), jnp.float32)
    g = 1.0 + 0.1 * jax.random.normal(ks[3], (C2,), jnp.float32)
    b = 0.1 * jax.random.normal(ks[4], (C2,), jnp.float32)

    M1, M2, M3 = build_dense_operators(w1, w2, w3)
    gp = np.ones((1, C2P), np.float32)
    gp[0, :C2] = np.asarray(g)
    bp = np.zeros((1, C2P), np.float32)
    bp[0, :C2] = np.asarray(b)

    params = dict(
        M1=jnp.asarray(M1, jnp.bfloat16),       # bf16 matmul operands
        M2=jnp.asarray(M2, jnp.bfloat16),
        M3=jnp.asarray(M3, jnp.bfloat16),
        gamma=jnp.asarray(gp, jnp.float32),     # (1, C2P) padded BN params
        beta=jnp.asarray(bp, jnp.float32),
    )
    raw = dict(w1=np.asarray(w1), w2=np.asarray(w2), w3=np.asarray(w3),
               g=np.asarray(g), b=np.asarray(b))
    return params, raw


# --------------------------------------------------------------------------
# Forward wrapper
# --------------------------------------------------------------------------
def discriminator_forward(x_nchw, params, tile_b_max=DEFAULT_TILE_B):
    B = x_nchw.shape[0]
    x2d = x_nchw.reshape(B, P0)

    # Batch tiling: as large as possible (amortize per-step overhead), but keep
    # >= 2 tiles whenever B allows it so both v7x TensorCores get work; rows are
    # multiples of 16 for bf16 sublane packing.
    tile_b = min(tile_b_max, _round_up(max(pl.cdiv(B, 2), 1), ROW_ALIGN))
    Bp = _round_up(B, tile_b)
    num_tiles = Bp // tile_b

    # Zero-pad batch (padded rows give h2 == 0 and contribute nothing to BN
    # sums) and pad the input slab to 128 lanes.  Stored as bf16: identical to
    # the in-kernel bf16 cast the matmul does anyway, but halves the HBM read.
    xp = jnp.zeros((Bp, K0P), jnp.bfloat16)
    xp = xp.at[:B, :P0].set(x2d.astype(jnp.bfloat16))

    cparams = pltpu.CompilerParams(
        dimension_semantics=("parallel",),
        vmem_limit_bytes=32 * 1024 * 1024,
    )

    # ---- kernel 1: conv1 -> leaky -> conv2 (+ lane-dense BN partial sums) ----
    h2, stats = pl.pallas_call(
        disc_front_kernel,
        out_shape=(jax.ShapeDtypeStruct((Bp, SLAB2), jnp.bfloat16),
                   jax.ShapeDtypeStruct((num_tiles, 2, SLAB2), jnp.float32)),
        grid=(num_tiles,),
        in_specs=[pl.BlockSpec((tile_b, K0P), lambda i: (i, 0)),
                  pl.BlockSpec((K0P, SLAB1), lambda i: (0, 0)),
                  pl.BlockSpec((SLAB1, SLAB2), lambda i: (0, 0))],
        out_specs=(pl.BlockSpec((tile_b, SLAB2), lambda i: (i, 0)),
                   pl.BlockSpec((1, 2, SLAB2), lambda i: (i, 0, 0))),
        compiler_params=cparams,
    )(xp, params["M1"], params["M2"])

    # ---- kernel 2: BN stats + affine -> leaky -> conv3 -> sigmoid ----
    # All BatchNorm scalar math is folded into the kernel (no XLA glue between
    # the two pallas_calls).  True element count divides out batch/channel pad.
    # TODO(synk): BatchNorm running_mean/running_var state updates (training-time
    # side effect) are not emitted; they do not affect the forward output.
    inv_n = 1.0 / float(B * P2)
    out = pl.pallas_call(
        _make_back_kernel(inv_n),
        out_shape=jax.ShapeDtypeStruct((Bp, OUTP), jnp.bfloat16),
        grid=(num_tiles,),
        in_specs=[pl.BlockSpec((tile_b, SLAB2), lambda i: (i, 0)),
                  pl.BlockSpec((num_tiles, 2, SLAB2), lambda i: (0, 0, 0)),
                  pl.BlockSpec((1, C2P), lambda i: (0, 0)),
                  pl.BlockSpec((1, C2P), lambda i: (0, 0)),
                  pl.BlockSpec((SLAB2, OUTP), lambda i: (0, 0))],
        out_specs=pl.BlockSpec((tile_b, OUTP), lambda i: (i, 0)),
        compiler_params=cparams,
    )(h2, stats, params["gamma"], params["beta"], params["M3"])

    return out[:B, :1].astype(jnp.float32).reshape(B, NC, 1, 1)   # back to NCHW


# --------------------------------------------------------------------------
# Pure-numpy reference (identical semantics to the PyTorch module)
# --------------------------------------------------------------------------
def reference_forward(x, raw):
    x = np.asarray(x, np.float32)

    def conv2d(h, w):
        Co, Ci, KH, KW = w.shape
        B, _, H, W = h.shape
        Ho, Wo = H - KH + 1, W - KW + 1
        out = np.zeros((B, Co, Ho, Wo), np.float32)
        for kh in range(KH):
            for kw in range(KW):
                out += np.einsum('bihw,oi->bohw',
                                 h[:, :, kh:kh + Ho, kw:kw + Wo], w[:, :, kh, kw])
        return out

    def leaky(h):
        return np.where(h > 0, h, LEAK * h).astype(np.float32)

    h1 = leaky(conv2d(x, raw["w1"]))
    h2 = conv2d(h1, raw["w2"])
    mean = h2.mean(axis=(0, 2, 3), keepdims=True)
    var = h2.var(axis=(0, 2, 3), keepdims=True)        # biased (training mode)
    h2 = (h2 - mean) / np.sqrt(var + EPS) * raw["g"].reshape(1, -1, 1, 1) \
         + raw["b"].reshape(1, -1, 1, 1)
    h2 = leaky(h2)
    logit = conv2d(h2, raw["w3"])
    return 1.0 / (1.0 + np.exp(-logit))


if __name__ == "__main__":
    key = jax.random.PRNGKey(0)
    kx, kp = jax.random.split(key)
    B = 2
    x = jax.random.normal(kx, (B, NC, H0, W0), jnp.float32)   # (B, 1, 10, 3) NCHW
    params, raw = init_params(kp)

    out = jax.block_until_ready(discriminator_forward(x, params))
    assert out.shape == (B, NC, 1, 1)

    ref = reference_forward(np.asarray(x), raw)
    np.testing.assert_allclose(np.asarray(out, np.float32), ref,
                               rtol=5e-2, atol=2e-2)
    print("KERNEL_OK")
</pallas_src>

<mosaic_0001>
module attributes {stable_mosaic.version = 11 : i64} {
  func.func @disc_front_kernel(%arg0: i32, %arg1: memref<16x128xbf16, #tpu.memory_space<vmem>>, %arg2: memref<128x768xbf16, #tpu.memory_space<vmem>>, %arg3: memref<768x768xbf16, #tpu.memory_space<vmem>>, %arg4: memref<16x768xbf16, #tpu.memory_space<vmem>>, %arg5: memref<1x2x768xf32, #tpu.memory_space<vmem>>) attributes {dimension_semantics = [#tpu.dimension_semantics<parallel>], iteration_bounds = array<i64: 1>, scalar_prefetch = 0 : i64, scratch_operands = 0 : i64, tpu.core_type = #tpu.core_type<tc>, window_params = [{transform_indices = @transform_0, window_bounds = array<i64: 16, 128>}, {pipeline_mode = #tpu.pipeline_mode<synchronous>, transform_indices = @transform_1, window_bounds = array<i64: 128, 768>}, {pipeline_mode = #tpu.pipeline_mode<synchronous>, transform_indices = @transform_2, window_bounds = array<i64: 768, 768>}, {transform_indices = @transform_3, window_bounds = array<i64: 16, 768>}, {transform_indices = @transform_4, window_bounds = array<i64: 1, 2, 768>}]} {
    %c0 = arith.constant 0 : index
    %c0_0 = arith.constant 0 : index
    %0 = vector.load %arg1[%c0, %c0_0] : memref<16x128xbf16, #tpu.memory_space<vmem>>, vector<16x128xbf16>
    %c0_1 = arith.constant 0 : index
    %c0_2 = arith.constant 0 : index
    %1 = vector.load %arg2[%c0_1, %c0_2] : memref<128x768xbf16, #tpu.memory_space<vmem>>, vector<128x768xbf16>
    %cst = arith.constant dense<0.000000e+00> : vector<16x768xf32>
    %2 = tpu.matmul %0, %1, %cst {dimension_numbers = #tpu.dot_dimension_numbers<[1], [0], [0], [1], [0, 0, 1, 1], [], []>} : vector<16x128xbf16>, vector<128x768xbf16>, vector<16x768xf32> -> vector<16x768xf32>
    %cst_3 = arith.constant 0.000000e+00 : f32
    %3 = vector.broadcast %cst_3 : f32 to vector<16x768xf32>
    %4 = arith.cmpf ogt, %2, %3 : vector<16x768xf32>
    %cst_4 = arith.constant 2.000000e-01 : f32
    %5 = vector.broadcast %cst_4 : f32 to vector<16x768xf32>
    %6 = arith.mulf %5, %2 : vector<16x768xf32>
    %7 = arith.select %4, %2, %6 : vector<16x768xi1>, vector<16x768xf32>
    %8 = arith.truncf %7 : vector<16x768xf32> to vector<16x768xbf16>
    %c0_5 = arith.constant 0 : index
    %c0_6 = arith.constant 0 : index
    %9 = vector.load %arg3[%c0_5, %c0_6] : memref<768x768xbf16, #tpu.memory_space<vmem>>, vector<768x768xbf16>
    %cst_7 = arith.constant dense<0.000000e+00> : vector<16x768xf32>
    %10 = tpu.matmul %8, %9, %cst_7 {dimension_numbers = #tpu.dot_dimension_numbers<[1], [0], [0], [1], [0, 0, 1, 1], [], []>} : vector<16x768xbf16>, vector<768x768xbf16>, vector<16x768xf32> -> vector<16x768xf32>
    %11 = arith.truncf %10 : vector<16x768xf32> to vector<16x768xbf16>
    %c0_8 = arith.constant 0 : index
    %c0_9 = arith.constant 0 : index
    %12 = vector.load %arg4[%c0_8, %c0_9] : memref<16x768xbf16, #tpu.memory_space<vmem>>, vector<16x768xbf16>
    tpu.vector_store %arg4[%c0_8, %c0_9], %11 {strides = array<i32>} : memref<16x768xbf16, #tpu.memory_space<vmem>>, vector<16x768xbf16>,
    %cst_10 = arith.constant dense<0.000000e+00> : vector<768xf32>
    %13 = vector.multi_reduction <add>, %10, %cst_10 [0] : vector<16x768xf32> to vector<768xf32>
    %14 = vector.shape_cast %13 : vector<768xf32> to vector<1x768xf32>
    %15 = arith.mulf %10, %10 : vector<16x768xf32>
    %cst_11 = arith.constant dense<0.000000e+00> : vector<768xf32>
    %16 = vector.multi_reduction <add>, %15, %cst_11 [0] : vector<16x768xf32> to vector<768xf32>
    %17 = vector.shape_cast %16 : vector<768xf32> to vector<1x768xf32>
    %18 = tpu.concatenate %14, %17 in 0 : vector<1x768xf32>, vector<1x768xf32> -> vector<2x768xf32>
    %19 = vector.shape_cast %18 : vector<2x768xf32> to vector<1x2x768xf32>
    %c0_12 = arith.constant 0 : index
    %c0_13 = arith.constant 0 : index
    %c0_14 = arith.constant 0 : index
    %20 = vector.load %arg5[%c0_12, %c0_13, %c0_14] : memref<1x2x768xf32, #tpu.memory_space<vmem>>, vector<1x2x768xf32>
    tpu.vector_store %arg5[%c0_12, %c0_13, %c0_14], %19 {strides = array<i32>} : memref<1x2x768xf32, #tpu.memory_space<vmem>>, vector<1x2x768xf32>,
    return
  }
  func.func @transform_0(%arg0: i32) -> (i32, i32) {
    %c0_i32 = arith.constant 0 : i32
    %c0_i32_0 = arith.constant 0 : i32
    return %arg0, %c0_i32 : i32, i32
  }
  func.func @transform_1(%arg0: i32) -> (i32, i32) {
    %c0_i32 = arith.constant 0 : i32
    %c0_i32_0 = arith.constant 0 : i32
    %c0_i32_1 = arith.constant 0 : i32
    return %c0_i32, %c0_i32_0 : i32, i32
  }
  func.func @transform_2(%arg0: i32) -> (i32, i32) {
    %c0_i32 = arith.constant 0 : i32
    %c0_i32_0 = arith.constant 0 : i32
    %c0_i32_1 = arith.constant 0 : i32
    return %c0_i32, %c0_i32_0 : i32, i32
  }
  func.func @transform_3(%arg0: i32) -> (i32, i32) {
    %c0_i32 = arith.constant 0 : i32
    %c0_i32_0 = arith.constant 0 : i32
    return %arg0, %c0_i32 : i32, i32
  }
  func.func @transform_4(%arg0: i32) -> (i32, i32, i32) {
    %c0_i32 = arith.constant 0 : i32
    %c0_i32_0 = arith.constant 0 : i32
    %c0_i32_1 = arith.constant 0 : i32
    return %arg0, %c0_i32, %c0_i32_0 : i32, i32, i32
  }
}

</mosaic_0001>

<bundles_post_ra>
// kernel: tpu_custom_call.1
= control target key start
LH: loop header
LB: loop body
LE: loop exit
PB: predicated region body
PF: predicated region fallthrough
CT: control target
= control target key end

     0   :  { %10 = vsyncpa [#allocation3], 0  ;;  %s4898_s0 = inlined_call_operand.hbm [shape: bf16[16,128], index: 0, kind: input, shape index: {}]   ;;  %s4899_s1 = inlined_call_operand.hbm [shape: bf16[128,768], index: 1, kind: input, shape index: {}]   ;;  %s4900_s2 = inlined_call_operand.hbm [shape: bf16[768,768], index: 2, kind: input, shape index: {}]   ;;  %s4901_s3 = inlined_call_operand.hbm [shape: bf16[16,768], index: 3, kind: output, shape index: {0}]   ;;  %s4902_s4 = inlined_call_operand.hbm [shape: f32[1,2,768], index: 4, kind: output, shape index: {1}]  }
   0x1   :  { %11 = vsyncpa [#allocation6], 0 }
   0x2   :  { %12 = vsyncpa [#allocation4], 0  ;;  %s31_s17 = sshll.u32 %s4899_s1, 4  ;;  %s32_s17 = int_to_ptr.hbm [resolvable:$true] %s31_s17 }
   0x3   :  { %13 = vsyncpa [#allocation10], 0  ;;  %s4713_s18 = smov [#allocation5]   ;;  %s18_s22 = sshll.u32 %s4898_s0, 4  ;;  %s19_s22 = int_to_ptr.hbm [resolvable:$true] %s18_s22 }
   0x4   :  { %s33_s19 = sshll.u32 %s4713_s18, 4  ;;  %s4714_s23 = smov 384   ;;  %s34_s19 = int_to_ptr.vmem [resolvable:$true] %s33_s19 }
   0x5   :  { %s4715_s24 = smov 24   ;;  %s4716_s25 = smov [#allocation2]  }
   0x6   :  { %39 = dma.hbm_to_vmem [thread:$0]  %s32_s17, 6144, %s34_s19, [#allocation6], %s4714_s23, %s4714_s23, %s4715_s24  }
   0x7   :  { %s20_s26 = sshll.u32 %s4716_s25, 4  ;;  %s4717_s1 = smov 64   ;;  %s21_s26 = int_to_ptr.vmem [resolvable:$true] %s20_s26 }
   0x8   :  { %s4718_s27 = smov 4   ;;  %s44_s30 = sshll.u32 %s4900_s2, 4  ;;  %s45_s30 = int_to_ptr.hbm [resolvable:$true] %s44_s30 }
   0x9   :  { %26 = dma.hbm_to_vmem [thread:$0]  %s19_s22, 128, %s21_s26, [#allocation3], %s4717_s1, %s4717_s1, %s4718_s27  }
   0xa   :  { %s4719_s5 = smov [#allocation7]  }
   0xb   :  { %s46_s0 = sshll.u32 %s4719_s5, 4  ;;  %s47_s0 = int_to_ptr.vmem [resolvable:$true] %s46_s0 }
   0xc   :  { %52 = dma.hbm_to_vmem [thread:$0]  %s45_s30, 36864, %s47_s0, [#allocation6], %s4714_s23, %s4714_s23, %s4715_s24  }
   0xd   :  { %4705 = dma.done.wait [#allocation3], 128  }
   0xe   :  { %4706 = vsyncadd [#allocation3], 4294967168 }
   0xf   :  { %4707 = dma.done.wait [#allocation6], 43008  }
  0x10   :  { %4708 = vsyncadd [#allocation6], 4294924288  ;;  %v3065_v0 = vld [vmem:[#allocation5 + $0x150] sm:$0xf]  ;;  %v4285_v1 = vld [vmem:[#allocation5 + $0x164] sm:$0xf0] }
  0x11   :  { %v4282_v2 = vld [vmem:[#allocation5 + $0x154] sm:$0xf]  ;;  %v3066_v3 = vor.u32 %v4285_v1, %v3065_v0  ;;  %v3067_v4 = vld [vmem:[#allocation5 + $0x168] sm:$0xf0]  ;;  %v3073_v5 = vld [vmem:[#allocation5 + $0x158] sm:$0xf] }
  0x12   :  { %v4286_v6 = vld [vmem:[#allocation5 + $0x16c] sm:$0xf0]  ;;  %v3070_v7 = vor.u32 %v4282_v2, %v3067_v4  ;;  %v4283_v9 = vld [vmem:[#allocation5 + $0x15c] sm:$0xf]  ;;  %v3075_v10 = vld [vmem:[#allocation5 + $0x170] sm:$0xf0] }
  0x13   :  { %v3074_v8 = vor.u32 %v4286_v6, %v3073_v5  ;;  %v3041_v11 = vld [vmem:[#allocation5 + $0x120] sm:$0xf]  ;;  %361 = vmatpush.bf16.msra.mxu0 %v3066_v3  ;;  %v3078_v12 = vor.u32 %v4283_v9, %v3075_v10  ;;  %v4279_v13 = vld [vmem:[#allocation5 + $0x134] sm:$0xf0]  ;;  %v4276_v14 = vld [vmem:[#allocation5 + $0x124] sm:$0xf] }
  0x14   :  { %v3043_v15 = vld [vmem:[#allocation5 + $0x138] sm:$0xf0]  ;;  %375 = vmatpush.bf16.msra.mxu1 %v3070_v7  ;;  %v3042_v16 = vor.u32 %v4279_v13, %v3041_v11  ;;  %v3049_v18 = vld [vmem:[#allocation5 + $0x128] sm:$0xf]  ;;  %v4280_v19 = vld [vmem:[#allocation5 + $0x13c] sm:$0xf0] }
  0x15   :  { %389 = vmatpush.bf16.msra.mxu2 %v3074_v8  ;;  %v3046_v17 = vor.u32 %v4276_v14, %v3043_v15  ;;  %v4277_v20 = vld [vmem:[#allocation5 + $0x12c] sm:$0xf]  ;;  %403 = vmatpush.bf16.msra.mxu3 %v3078_v12  ;;  %v3050_v21 = vor.u32 %v4280_v19, %v3049_v18  ;;  %v3051_v22 = vld [vmem:[#allocation5 + $0x140] sm:$0xf0]  ;;  %v3017_v23 = vld [vmem:[#allocation5 + $0xf0] sm:$0xf] }
  0x16   :  { %v4273_v24 = vld [vmem:[#allocation5 + $0x104] sm:$0xf0]  ;;  %v3054_v25 = vor.u32 %v4277_v20, %v3051_v22  ;;  %v4270_v26 = vld [vmem:[#allocation5 + $0xf4] sm:$0xf]  ;;  %v3019_v27 = vld [vmem:[#allocation5 + $0x108] sm:$0xf0] }
  0x17   :  { %v3025_v28 = vld [vmem:[#allocation5 + $0xf8] sm:$0xf]  ;;  %362 = vmatpush.bf16.msra.mxu0 %v3042_v16  ;;  %v3018_v29 = vor.u32 %v4273_v24, %v3017_v23  ;;  %v4274_v30 = vld [vmem:[#allocation5 + $0x10c] sm:$0xf0]  ;;  %v4271_v31 = vld [vmem:[#allocation5 + $0xfc] sm:$0xf]  ;;  %v3022_v33 = vor.u32 %v4270_v26, %v3019_v27 }
  0x18   :  { %v3027_v32 = vld [vmem:[#allocation5 + $0x110] sm:$0xf0]  ;;  %376 = vmatpush.bf16.msra.mxu1 %v3046_v17  ;;  %v3026_v34 = vor.u32 %v4274_v30, %v3025_v28  ;;  %v2993_v35 = vld [vmem:[#allocation5 + $0xc0] sm:$0xf]  ;;  %v4267_v36 = vld [vmem:[#allocation5 + $0xd4] sm:$0xf0] }
  0x19   :  { %390 = vmatpush.bf16.msra.mxu2 %v3050_v21  ;;  %v4264_v37 = vld [vmem:[#allocation5 + $0xc4] sm:$0xf]  ;;  %404 = vmatpush.bf16.msra.mxu3 %v3054_v25  ;;  %v3030_v38 = vor.u32 %v4271_v31, %v3027_v32  ;;  %v2995_v39 = vld [vmem:[#allocation5 + $0xd8] sm:$0xf0]  ;;  %v3001_v40 = vld [vmem:[#allocation5 + $0xc8] sm:$0xf]  ;;  %v2994_v44 = vor.u32 %v4267_v36, %v2993_v35 }
  0x1a   :  { %v4268_v41 = vld [vmem:[#allocation5 + $0xdc] sm:$0xf0]  ;;  %v4265_v42 = vld [vmem:[#allocation5 + $0xcc] sm:$0xf]  ;;  %v3003_v43 = vld [vmem:[#allocation5 + $0xe0] sm:$0xf0]  ;;  %v2998_v45 = vor.u32 %v4264_v37, %v2995_v39 }
  0x1b   :  { %363 = vmatpush.bf16.msra.mxu0 %v3018_v29  ;;  %v3002_v46 = vor.u32 %v4268_v41, %v3001_v40  ;;  %v2969_v47 = vld [vmem:[#allocation5 + $0x90] sm:$0xf]  ;;  %v4261_v48 = vld [vmem:[#allocation5 + $0xa4] sm:$0xf0]  ;;  %v4258_v49 = vld [vmem:[#allocation5 + $0x94] sm:$0xf]  ;;  %v3006_v50 = vor.u32 %v4265_v42, %v3003_v43 }
  0x1c   :  { %377 = vmatpush.bf16.msra.mxu1 %v3022_v33  ;;  %v2971_v51 = vld [vmem:[#allocation5 + $0xa8] sm:$0xf0]  ;;  %v2977_v52 = vld [vmem:[#allocation5 + $0x98] sm:$0xf]  ;;  %v4262_v53 = vld [vmem:[#allocation5 + $0xac] sm:$0xf0]  ;;  %v2970_v56 = vor.u32 %v4261_v48, %v2969_v47 }
  0x1d   :  { %391 = vmatpush.bf16.msra.mxu2 %v3026_v34  ;;  %405 = vmatpush.bf16.msra.mxu3 %v3030_v38  ;;  %v4259_v54 = vld [vmem:[#allocation5 + $0x9c] sm:$0xf]  ;;  %v2979_v55 = vld [vmem:[#allocation5 + $0xb0] sm:$0xf0]  ;;  %v2974_v57 = vor.u32 %v4258_v49, %v2971_v51  ;;  %v2978_v58 = vor.u32 %v4262_v53, %v2977_v52  ;;  %v2945_v59 = vld [vmem:[#allocation5 + $0x60] sm:$0xf] }
  0x1e   :  { %v4255_v60 = vld [vmem:[#allocation5 + $0x74] sm:$0xf0]  ;;  %v4252_v61 = vld [vmem:[#allocation5 + $0x64] sm:$0xf]  ;;  %v2982_v62 = vor.u32 %v4259_v54, %v2979_v55  ;;  %v2947_v63 = vld [vmem:[#allocation5 + $0x78] sm:$0xf0] }
  0x1f   :  { %364 = vmatpush.bf16.msra.mxu0 %v2994_v44  ;;  %v2953_v0 = vld [vmem:[#allocation5 + $0x68] sm:$0xf]  ;;  %v4256_v1 = vld [vmem:[#allocation5 + $0x7c] sm:$0xf0]  ;;  %v4253_v2 = vld [vmem:[#allocation5 + $0x6c] sm:$0xf]  ;;  %v2946_v4 = vor.u32 %v4255_v60, %v2945_v59  ;;  %v2950_v5 = vor.u32 %v4252_v61, %v2947_v63 }
  0x20   :  { %378 = vmatpush.bf16.msra.mxu1 %v2998_v45  ;;  %v2955_v3 = vld [vmem:[#allocation5 + $0x80] sm:$0xf0]  ;;  %v2954_v6 = vor.u32 %v4256_v1, %v2953_v0  ;;  %v2921_v7 = vld [vmem:[#allocation5 + $0x30] sm:$0xf]  ;;  %v4249_v8 = vld [vmem:[#allocation5 + $0x44] sm:$0xf0] }
  0x21   :  { %392 = vmatpush.bf16.msra.mxu2 %v3002_v46  ;;  %406 = vmatpush.bf16.msra.mxu3 %v3006_v50  ;;  %v4246_v9 = vld [vmem:[#allocation5 + $0x34] sm:$0xf]  ;;  %v2958_v10 = vor.u32 %v4253_v2, %v2955_v3  ;;  %v2923_v11 = vld [vmem:[#allocation5 + $0x48] sm:$0xf0]  ;;  %v2929_v12 = vld [vmem:[#allocation5 + $0x38] sm:$0xf]  ;;  %v2922_v16 = vor.u32 %v4249_v8, %v2921_v7 }
  0x22   :  { %v4250_v13 = vld [vmem:[#allocation5 + $0x4c] sm:$0xf0]  ;;  %v4247_v14 = vld [vmem:[#allocation5 + $0x3c] sm:$0xf]  ;;  %v2931_v15 = vld [vmem:[#allocation5 + $0x50] sm:$0xf0]  ;;  %v2926_v18 = vor.u32 %v4246_v9, %v2923_v11 }
  0x23   :  { %365 = vmatpush.bf16.msra.mxu0 %v2970_v56  ;;  %v2897_v17 = vld [vmem:[#allocation5] sm:$0xf]  ;;  %v2930_v19 = vor.u32 %v4250_v13, %v2929_v12  ;;  %v4243_v20 = vld [vmem:[#allocation5 + $0x14] sm:$0xf0]  ;;  %v4240_v21 = vld [vmem:[#allocation5 + $0x4] sm:$0xf]  ;;  %v2934_v23 = vor.u32 %v4247_v14, %v2931_v15 }
  0x24   :  { %379 = vmatpush.bf16.msra.mxu1 %v2974_v57  ;;  %v2899_v22 = vld [vmem:[#allocation5 + $0x18] sm:$0xf0]  ;;  %v2905_v24 = vld [vmem:[#allocation5 + $0x8] sm:$0xf]  ;;  %v4244_v25 = vld [vmem:[#allocation5 + $0x1c] sm:$0xf0]  ;;  %v2898_v30 = vor.u32 %v4243_v20, %v2897_v17 }
  0x25   :  { %393 = vmatpush.bf16.msra.mxu2 %v2978_v58  ;;  %407 = vmatpush.bf16.msra.mxu3 %v2982_v62  ;;  %v4241_v26 = vld [vmem:[#allocation5 + $0xc] sm:$0xf]  ;;  %v2907_v27 = vld [vmem:[#allocation5 + $0x20] sm:$0xf0]  ;;  %v3081_v28 = vld [vmem:[#allocation5 + $0x160] sm:$0xf]  ;;  %v2902_v33 = vor.u32 %v4240_v21, %v2899_v22  ;;  %v2906_v34 = vor.u32 %v4244_v25, %v2905_v24 }
  0x26   :  { %v4287_v29 = vld [vmem:[#allocation5 + $0x174] sm:$0xf0]  ;;  %v4284_v31 = vld [vmem:[#allocation5 + $0x164] sm:$0xf]  ;;  %v3083_v32 = vld [vmem:[#allocation5 + $0x178] sm:$0xf0]  ;;  %v2910_v35 = vor.u32 %v4241_v26, %v2907_v27 }
  0x27   :  { %366 = vmatpush.bf16.msra.mxu0 %v2946_v4  ;;  %v3082_v36 = vor.u32 %v4287_v29, %v3081_v28  ;;  %v3086_v37 = vor.u32 %v4284_v31, %v3083_v32  ;;  %v4762_v38 = vld [vmem:[#allocation2] sm:$0xff]  ;;  %v3057_v39 = vld [vmem:[#allocation5 + $0x130] sm:$0xf]  ;;  %v4281_v40 = vld [vmem:[#allocation5 + $0x144] sm:$0xf0]  ;;  %vm2827_vm12 = vcmask 1040384  }
  0x28   :  { %380 = vmatpush.bf16.msra.mxu1 %v2950_v5  ;;  %v4278_v41 = vld [vmem:[#allocation5 + $0x134] sm:$0xf]  ;;  %v3059_v42 = vld [vmem:[#allocation5 + $0x148] sm:$0xf0]  ;;  %v3033_v43 = vld [vmem:[#allocation5 + $0x100] sm:$0xf]  ;;  %v3058_v45 = vor.u32 %v4281_v40, %v3057_v39 }
  0x29   :  { %394 = vmatpush.bf16.msra.mxu2 %v2954_v6  ;;  %408 = vmatpush.bf16.msra.mxu3 %v2958_v10  ;;  %v4275_v44 = vld [vmem:[#allocation5 + $0x114] sm:$0xf0]  ;;  %v4272_v46 = vld [vmem:[#allocation5 + $0x104] sm:$0xf]  ;;  %v3257_v47 = vld [vmem:[#allocation7 + $0x150] sm:$0xf]  ;;  %v3062_v50 = vor.u32 %v4278_v41, %v3059_v42 }
  0x2a   :  { %v4333_v48 = vld [vmem:[#allocation7 + $0x164] sm:$0xf0]  ;;  %v3449_v49 = vld [vmem:[#allocation7 + $0x2d0] sm:$0xf]  ;;  %v3233_v53 = vld [vmem:[#allocation7 + $0x120] sm:$0xf]  ;;  %v3034_v60 = vor.u32 %v4275_v44, %v3033_v43 }
  0x2b   :  { %367 = vmatpush.bf16.msra.mxu0 %v2922_v16  ;;  %v3258_v51 = vor.u32 %v4333_v48, %v3257_v47  ;;  %v4381_v52 = vld [vmem:[#allocation7 + $0x2e4] sm:$0xf0]  ;;  %v4327_v54 = vld [vmem:[#allocation7 + $0x134] sm:$0xf0]  ;;  %v3035_v55 = vld [vmem:[#allocation5 + $0x118] sm:$0xf0] }
  0x2c   :  { %381 = vmatpush.bf16.msra.mxu1 %v2926_v18  ;;  %v3450_v56 = vor.u32 %v4381_v52, %v3449_v49  ;;  %v3425_v57 = vld [vmem:[#allocation7 + $0x2a0] sm:$0xf]  ;;  %v4375_v58 = vld [vmem:[#allocation7 + $0x2b4] sm:$0xf0]  ;;  %v3234_v59 = vor.u32 %v4327_v54, %v3233_v53  ;;  %v3009_v61 = vld [vmem:[#allocation5 + $0xd0] sm:$0xf]  ;;  %v3038_v1 = vor.u32 %v4272_v46, %v3035_v55 }
  0x2d   :  { %395 = vmatpush.bf16.msra.mxu2 %v2930_v19  ;;  %409 = vmatpush.bf16.msra.mxu3 %v2934_v23  ;;  %v3426_v62 = vor.u32 %v4375_v58, %v3425_v57  ;;  %v3209_v63 = vld [vmem:[#allocation7 + $0xf0] sm:$0xf]  ;;  %v4321_v0 = vld [vmem:[#allocation7 + $0x104] sm:$0xf0]  ;;  %v4266_v5 = vld [vmem:[#allocation5 + $0xd4] sm:$0xf] }
  0x2e   :  { %v4269_v2 = vld [vmem:[#allocation5 + $0xe4] sm:$0xf0]  ;;  %v3401_v3 = vld [vmem:[#allocation7 + $0x270] sm:$0xf]  ;;  %v3011_v6 = vld [vmem:[#allocation5 + $0xe8] sm:$0xf0]  ;;  %v3210_v7 = vor.u32 %v4321_v0, %v3209_v63 }
  0x2f   :  { %368 = vmatpush.bf16.msra.mxu0 %v2898_v30  ;;  %v4369_v4 = vld [vmem:[#allocation7 + $0x284] sm:$0xf0]  ;;  %v3010_v8 = vor.u32 %v4269_v2, %v3009_v61  ;;  %v2985_v9 = vld [vmem:[#allocation5 + $0xa0] sm:$0xf]  ;;  %v4315_v12 = vld [vmem:[#allocation7 + $0xd4] sm:$0xf0]  ;;  %v3014_v13 = vor.u32 %v4266_v5, %v3011_v6 }
  0x30   :  { %382 = vmatpush.bf16.msra.mxu1 %v2902_v33  ;;  %v3402_v10 = vor.u32 %v4369_v4, %v3401_v3  ;;  %v3185_v11 = vld [vmem:[#allocation7 + $0xc0] sm:$0xf]  ;;  %v4263_v14 = vld [vmem:[#allocation5 + $0xb4] sm:$0xf0]  ;;  %v4260_v17 = vld [vmem:[#allocation5 + $0xa4] sm:$0xf] }
  0x31   :  { %396 = vmatpush.bf16.msra.mxu2 %v2906_v34  ;;  %410 = vmatpush.bf16.msra.mxu3 %v2910_v35  ;;  %v3377_v15 = vld [vmem:[#allocation7 + $0x240] sm:$0xf]  ;;  %v4363_v16 = vld [vmem:[#allocation7 + $0x254] sm:$0xf0]  ;;  %v2987_v18 = vld [vmem:[#allocation5 + $0xb8] sm:$0xf0]  ;;  %v3186_v19 = vor.u32 %v4315_v12, %v3185_v11  ;;  %v2986_v20 = vor.u32 %v4263_v14, %v2985_v9 }
  0x32   :  { %369 = vmatmul.bf16.vlgmr.msra.gmra.mxu0 %v4762_v38  ;;  %v2961_v21 = vld [vmem:[#allocation5 + $0x70] sm:$0xf]  ;;  %v3378_v22 = vor.u32 %v4363_v16, %v3377_v15  ;;  %v4309_v24 = vld [vmem:[#allocation7 + $0xa4] sm:$0xf0]  ;;  %v2990_v25 = vor.u32 %v4260_v17, %v2987_v18  ;;  %v4254_v29 = vld [vmem:[#allocation5 + $0x74] sm:$0xf] }
  0x33   :  { %417 = vmatpush.bf16.msrb.mxu0 %v3082_v36  ;;  %383 = vmatmul.bf16.vlgmr.msra.gmra.mxu1 %v4762_v38  ;;  %v3161_v23 = vld [vmem:[#allocation7 + $0x90] sm:$0xf]  ;;  %v4257_v26 = vld [vmem:[#allocation5 + $0x84] sm:$0xf0]  ;;  %v2963_v30 = vld [vmem:[#allocation5 + $0x88] sm:$0xf0] }
  0x34   :  { %431 = vmatpush.bf16.msrb.mxu1 %v3086_v37  ;;  %397 = vmatmul.bf16.vlgmr.msra.gmra.mxu2 %v4762_v38  ;;  %v3353_v27 = vld [vmem:[#allocation7 + $0x210] sm:$0xf]  ;;  %v4357_v28 = vld [vmem:[#allocation7 + $0x224] sm:$0xf0]  ;;  %v3162_v31 = vor.u32 %v4309_v24, %v3161_v23  ;;  %v2962_v32 = vor.u32 %v4257_v26, %v2961_v21  ;;  %v2937_v33 = vld [vmem:[#allocation5 + $0x40] sm:$0xf]  ;;  %v2966_v37 = vor.u32 %v4254_v29, %v2963_v30 }
  0x35   :  { %411 = vmatmul.bf16.vlgmr.msra.gmra.mxu3 %v4762_v38  ;;  %2215 = vmatpush.bf16.msrb.mxu2 %v3258_v51  ;;  %v3354_v34 = vor.u32 %v4357_v28, %v3353_v27  ;;  %v3137_v35 = vld [vmem:[#allocation7 + $0x60] sm:$0xf]  ;;  %v4303_v36 = vld [vmem:[#allocation7 + $0x74] sm:$0xf0]  ;;  %v4248_v42 = vld [vmem:[#allocation5 + $0x44] sm:$0xf] }
  0x36   :  { %2229 = vmatpush.bf16.msrb.mxu3 %v3450_v56  ;;  %v4251_v39 = vld [vmem:[#allocation5 + $0x54] sm:$0xf0]  ;;  %v3329_v40 = vld [vmem:[#allocation7 + $0x1e0] sm:$0xf]  ;;  %v2939_v43 = vld [vmem:[#allocation5 + $0x58] sm:$0xf0] }
  0x37   :  { %418 = vmatpush.bf16.msrb.mxu0 %v3058_v45  ;;  %v4351_v41 = vld [vmem:[#allocation7 + $0x1f4] sm:$0xf0]  ;;  %v2913_v44 = vld [vmem:[#allocation5 + $0x10] sm:$0xf]  ;;  %v3138_v45 = vor.u32 %v4303_v36, %v3137_v35  ;;  %v2938_v46 = vor.u32 %v4251_v39, %v2937_v33  ;;  %v4245_v47 = vld [vmem:[#allocation5 + $0x24] sm:$0xf0]  ;;  %v2942_v51 = vor.u32 %v4248_v42, %v2939_v43 }
  0x38   :  { %432 = vmatpush.bf16.msrb.mxu1 %v3062_v50  ;;  %v3330_v48 = vor.u32 %v4351_v41, %v3329_v40  ;;  %v3113_v49 = vld [vmem:[#allocation7 + $0x30] sm:$0xf]  ;;  %v4297_v50 = vld [vmem:[#allocation7 + $0x44] sm:$0xf0]  ;;  %v4242_v52 = vld [vmem:[#allocation5 + $0x14] sm:$0xf]  ;;  %v2914_v61 = vor.u32 %v4245_v47, %v2913_v44 }
  0x39   :  { %2216 = vmatpush.bf16.msrb.mxu2 %v3234_v59  ;;  %v3305_v53 = vld [vmem:[#allocation7 + $0x1b0] sm:$0xf]  ;;  %v4345_v54 = vld [vmem:[#allocation7 + $0x1c4] sm:$0xf0]  ;;  %v2915_v55 = vld [vmem:[#allocation5 + $0x28] sm:$0xf0] }
  0x3a   :  { %2230 = vmatpush.bf16.msrb.mxu3 %v3426_v62  ;;  %v3641_v56 = vld [vmem:[#allocation7 + $0x450] sm:$0xf]  ;;  %v4429_v57 = vld [vmem:[#allocation7 + $0x464] sm:$0xf0]  ;;  %v3617_v62 = vld [vmem:[#allocation7 + $0x420] sm:$0xf]  ;;  %v3306_v63 = vor.u32 %v4345_v54, %v3305_v53  ;;  %v2918_v2 = vor.u32 %v4242_v52, %v2915_v55 }
  0x3b   :  { %419 = vmatpush.bf16.msrb.mxu0 %v3034_v60  ;;  %v3833_v58 = vld [vmem:[#allocation7 + $0x5d0] sm:$0xf]  ;;  %v4477_v59 = vld [vmem:[#allocation7 + $0x5e4] sm:$0xf0]  ;;  %v3114_v60 = vor.u32 %v4297_v50, %v3113_v49  ;;  %v3089_v0 = vld [vmem:[#allocation7] sm:$0xf]  ;;  %v3642_v3 = vor.u32 %v4429_v57, %v3641_v56 }
  0x3c   :  { %433 = vmatpush.bf16.msrb.mxu1 %v3038_v1  ;;  %v4291_v1 = vld [vmem:[#allocation7 + $0x14] sm:$0xf0]  ;;  %v3281_v5 = vld [vmem:[#allocation7 + $0x180] sm:$0xf]  ;;  %v4025_v9 = vld [vmem:[#allocation7 + $0x750] sm:$0xf] }
  0x3d   :  { %2217 = vmatpush.bf16.msrb.mxu2 %v3210_v7  ;;  %v4423_v4 = vld [vmem:[#allocation7 + $0x434] sm:$0xf0]  ;;  %v3834_v7 = vor.u32 %v4477_v59, %v3833_v58  ;;  %v3090_v12 = vor.u32 %v4291_v1, %v3089_v0  ;;  %v4573_v14 = vld [vmem:[#allocation7 + $0x8e4] sm:$0xf0]  ;;  %v3593_v17 = vld [vmem:[#allocation7 + $0x3f0] sm:$0xf] }
  0x3e   :  { %2231 = vmatpush.bf16.msrb.mxu3 %v3402_v10  ;;  %v4339_v6 = vld [vmem:[#allocation7 + $0x194] sm:$0xf0]  ;;  %v4525_v10 = vld [vmem:[#allocation7 + $0x764] sm:$0xf0]  ;;  %v3618_v16 = vor.u32 %v4423_v4, %v3617_v62  ;;  %v3785_v21 = vld [vmem:[#allocation7 + $0x570] sm:$0xf] }
  0x3f   :  { %420 = vmatpush.bf16.msrb.mxu0 %v3010_v8  ;;  %v3809_v8 = vld [vmem:[#allocation7 + $0x5a0] sm:$0xf]  ;;  %v4471_v11 = vld [vmem:[#allocation7 + $0x5b4] sm:$0xf0]  ;;  %v3282_v15 = vor.u32 %v4339_v6, %v3281_v5  ;;  %v4417_v18 = vld [vmem:[#allocation7 + $0x404] sm:$0xf0] }
  0x40   :  { %434 = vmatpush.bf16.msrb.mxu1 %v3014_v13  ;;  %v4217_v13 = vld [vmem:[#allocation7 + $0x8d0] sm:$0xf]  ;;  %v4001_v23 = vld [vmem:[#allocation7 + $0x720] sm:$0xf]  ;;  %v4519_v24 = vld [vmem:[#allocation7 + $0x734] sm:$0xf0]  ;;  %v3594_v28 = vor.u32 %v4417_v18, %v3593_v17 }
  0x41   :  { %2218 = vmatpush.bf16.msrb.mxu2 %v3186_v19  ;;  %v4026_v19 = vor.u32 %v4525_v10, %v4025_v9  ;;  %v4193_v26 = vld [vmem:[#allocation7 + $0x8a0] sm:$0xf]  ;;  %v4567_v27 = vld [vmem:[#allocation7 + $0x8b4] sm:$0xf0]  ;;  %v3977_v35 = vld [vmem:[#allocation7 + $0x6f0] sm:$0xf] }
  0x42   :  { %2232 = vmatpush.bf16.msrb.mxu3 %v3378_v22  ;;  %v4218_v22 = vor.u32 %v4573_v14, %v4217_v13  ;;  %v3569_v29 = vld [vmem:[#allocation7 + $0x3c0] sm:$0xf]  ;;  %v4411_v30 = vld [vmem:[#allocation7 + $0x3d4] sm:$0xf0]  ;;  %v4513_v36 = vld [vmem:[#allocation7 + $0x704] sm:$0xf0] }
  0x43   :  { %421 = vmatpush.bf16.msrb.mxu0 %v2986_v20  ;;  %v3810_v20 = vor.u32 %v4471_v11, %v3809_v8  ;;  %v3761_v33 = vld [vmem:[#allocation7 + $0x540] sm:$0xf]  ;;  %v4169_v39 = vld [vmem:[#allocation7 + $0x870] sm:$0xf]  ;;  %v4561_v40 = vld [vmem:[#allocation7 + $0x884] sm:$0xf0]  ;;  %v3570_v41 = vor.u32 %v4411_v30, %v3569_v29  ;;  %v3978_v43 = vor.u32 %v4513_v36, %v3977_v35 }
  0x44   :  { %435 = vmatpush.bf16.msrb.mxu1 %v2990_v25  ;;  %v4465_v25 = vld [vmem:[#allocation7 + $0x584] sm:$0xf0]  ;;  %v3953_v47 = vld [vmem:[#allocation7 + $0x6c0] sm:$0xf]  ;;  %v4399_v56 = vld [vmem:[#allocation7 + $0x374] sm:$0xf0] }
  0x45   :  { %2219 = vmatpush.bf16.msrb.mxu2 %v3162_v31  ;;  %v4002_v31 = vor.u32 %v4519_v24, %v4001_v23  ;;  %v4405_v42 = vld [vmem:[#allocation7 + $0x3a4] sm:$0xf0]  ;;  %v4145_v50 = vld [vmem:[#allocation7 + $0x840] sm:$0xf]  ;;  %v4447_v59 = vld [vmem:[#allocation7 + $0x4f4] sm:$0xf0] }
  0x46   :  { %2233 = vmatpush.bf16.msrb.mxu3 %v3354_v34  ;;  %v4194_v34 = vor.u32 %v4567_v27, %v4193_v26  ;;  %v4453_v49 = vld [vmem:[#allocation7 + $0x524] sm:$0xf0]  ;;  %v3521_v55 = vld [vmem:[#allocation7 + $0x360] sm:$0xf]  ;;  %v3497_v62 = vld [vmem:[#allocation7 + $0x330] sm:$0xf] }
  0x47   :  { %422 = vmatpush.bf16.msrb.mxu0 %v2962_v32  ;;  %v3786_v32 = vor.u32 %v4465_v25, %v3785_v21  ;;  %v3713_v58 = vld [vmem:[#allocation7 + $0x4e0] sm:$0xf]  ;;  %v3689_v0 = vld [vmem:[#allocation7 + $0x4b0] sm:$0xf]  ;;  %v4441_v1 = vld [vmem:[#allocation7 + $0x4c4] sm:$0xf0] }
  0x48   :  { %436 = vmatpush.bf16.msrb.mxu1 %v2966_v37  ;;  %v4459_v37 = vld [vmem:[#allocation7 + $0x554] sm:$0xf0]  ;;  %v3473_v4 = vld [vmem:[#allocation7 + $0x300] sm:$0xf]  ;;  %v4330_v8 = vld [vmem:[#allocation7 + $0x154] sm:$0xf] }
  0x49   :  { %2220 = vmatpush.bf16.msrb.mxu2 %v3138_v45  ;;  %v3762_v44 = vor.u32 %v4459_v37, %v3761_v33  ;;  %v3737_v45 = vld [vmem:[#allocation7 + $0x510] sm:$0xf]  ;;  %v4387_v5 = vld [vmem:[#allocation7 + $0x314] sm:$0xf0]  ;;  %v3665_v6 = vld [vmem:[#allocation7 + $0x480] sm:$0xf] }
  0x4a   :  { %2234 = vmatpush.bf16.msrb.mxu3 %v3330_v48  ;;  %v4507_v48 = vld [vmem:[#allocation7 + $0x6d4] sm:$0xf0]  ;;  %v3738_v54 = vor.u32 %v4453_v49, %v3737_v45  ;;  %v3259_v9 = vld [vmem:[#allocation7 + $0x168] sm:$0xf0]  ;;  %v4378_v10 = vld [vmem:[#allocation7 + $0x2d4] sm:$0xf] }
  0x4b   :  { %423 = vmatpush.bf16.msrb.mxu0 %v2938_v46  ;;  %v4170_v46 = vor.u32 %v4561_v40, %v4169_v39  ;;  %v3954_v53 = vor.u32 %v4507_v48, %v3953_v47  ;;  %v3451_v11 = vld [vmem:[#allocation7 + $0x2e8] sm:$0xf0]  ;;  %v3262_v14 = vor.u32 %v4330_v8, %v3259_v9  ;;  %v3235_v17 = vld [vmem:[#allocation7 + $0x138] sm:$0xf0]  ;;  %v4372_v18 = vld [vmem:[#allocation7 + $0x2a4] sm:$0xf] }
  0x4c   :  { %437 = vmatpush.bf16.msrb.mxu1 %v2942_v51  ;;  %v4555_v51 = vld [vmem:[#allocation7 + $0x854] sm:$0xf0]  ;;  %v3211_v23 = vld [vmem:[#allocation7 + $0x108] sm:$0xf0]  ;;  %v4366_v24 = vld [vmem:[#allocation7 + $0x274] sm:$0xf] }
  0x4d   :  { %2221 = vmatpush.bf16.msrb.mxu2 %v3114_v60  ;;  %v4146_v57 = vor.u32 %v4555_v51, %v4145_v50  ;;  %v3522_v60 = vor.u32 %v4399_v56, %v3521_v55  ;;  %v3403_v25 = vld [vmem:[#allocation7 + $0x288] sm:$0xf0]  ;;  %v4501_v29 = vld [vmem:[#allocation7 + $0x6a4] sm:$0xf0]  ;;  %v4121_v30 = vld [vmem:[#allocation7 + $0x810] sm:$0xf] }
  0x4e   :  { %2235 = vmatpush.bf16.msrb.mxu3 %v3306_v63  ;;  %v4393_v63 = vld [vmem:[#allocation7 + $0x344] sm:$0xf0]  ;;  %v3406_v27 = vor.u32 %v4366_v24, %v3403_v25  ;;  %v3187_v35 = vld [vmem:[#allocation7 + $0xd8] sm:$0xf0]  ;;  %v4360_v36 = vld [vmem:[#allocation7 + $0x244] sm:$0xf] }
  0x4f   :  { %424 = vmatpush.bf16.msrb.mxu0 %v2914_v61  ;;  %v3714_v61 = vor.u32 %v4447_v59, %v3713_v58  ;;  %v3379_v39 = vld [vmem:[#allocation7 + $0x258] sm:$0xf0]  ;;  %v3163_v47 = vld [vmem:[#allocation7 + $0xa8] sm:$0xf0]  ;;  %v4354_v48 = vld [vmem:[#allocation7 + $0x214] sm:$0xf] }
  0x50   :  { %438 = vmatpush.bf16.msrb.mxu1 %v2918_v2  ;;  %v3498_v2 = vor.u32 %v4393_v63, %v3497_v62  ;;  %v3382_v40 = vor.u32 %v4360_v36, %v3379_v39  ;;  %v3355_v50 = vld [vmem:[#allocation7 + $0x228] sm:$0xf0]  ;;  %v4537_v56 = vld [vmem:[#allocation7 + $0x7c4] sm:$0xf0]  ;;  %v4300_v58 = vld [vmem:[#allocation7 + $0x64] sm:$0xf] }
  0x51   :  { %2222 = vmatpush.bf16.msrb.mxu2 %v3090_v12  ;;  %v3474_v12 = vor.u32 %v4387_v5, %v3473_v4  ;;  %v3358_v51 = vor.u32 %v4354_v48, %v3355_v50  ;;  %v3139_v59 = vld [vmem:[#allocation7 + $0x78] sm:$0xf0]  ;;  %v4531_v4 = vld [vmem:[#allocation7 + $0x794] sm:$0xf0]  ;;  %v4342_v8 = vld [vmem:[#allocation7 + $0x1b4] sm:$0xf] }
  0x52   :  { %425 = vmatmul.bf16.vlgmr.msrb.gmra.mxu0 %v4762_v38  ;;  %2236 = vmatpush.bf16.msrb.mxu3 %v3282_v15  ;;  %v3454_v15 = vor.u32 %v4378_v10, %v3451_v11  ;;  %v3331_v62 = vld [vmem:[#allocation7 + $0x1f8] sm:$0xf0]  ;;  %v3307_v9 = vld [vmem:[#allocation7 + $0x1c8] sm:$0xf0]  ;;  %vm2844_vm13 = vcmask 1041408   ;;  %vm2846_vm14 = vcmask 1045508  }
  0x53   :  { %2243 = vmatpush.bf16.msra.mxu0 %v3642_v3  ;;  %439 = vmatmul.bf16.vlgmr.msrb.gmra.mxu1 %v4762_v38  ;;  %v3545_v38 = vld [vmem:[#allocation7 + $0x390] sm:$0xf]  ;;  %v3690_v3 = vor.u32 %v4441_v1, %v3689_v0  ;;  %v3857_v0 = vld [vmem:[#allocation7 + $0x600] sm:$0xf]  ;;  %v4483_v1 = vld [vmem:[#allocation7 + $0x614] sm:$0xf0]  ;;  %v3310_v11 = vor.u32 %v4342_v8, %v3307_v9 }
  0x54   :  { %2257 = vmatpush.bf16.msra.mxu1 %v3834_v7  ;;  %v3546_v52 = vor.u32 %v4405_v42, %v3545_v38  ;;  %v4435_v7 = vld [vmem:[#allocation7 + $0x494] sm:$0xf0]  ;;  %v4097_v42 = vld [vmem:[#allocation7 + $0x7e0] sm:$0xf]  ;;  %v4219_v48 = vld [vmem:[#allocation7 + $0x8e8] sm:$0xf0] }
  0x55   :  { %2271 = vmatpush.bf16.msra.mxu2 %v4026_v19  ;;  %v3666_v13 = vor.u32 %v4435_v7, %v3665_v6  ;;  %v3427_v19 = vld [vmem:[#allocation7 + $0x2b8] sm:$0xf0]  ;;  %v4495_v38 = vld [vmem:[#allocation7 + $0x674] sm:$0xf0]  ;;  %v4294_v6 = vld [vmem:[#allocation7 + $0x34] sm:$0xf] }
  0x56   :  { %2285 = vmatpush.bf16.msra.mxu3 %v4218_v22  ;;  %v3430_v21 = vor.u32 %v4372_v18, %v3427_v19  ;;  %v4318_v22 = vld [vmem:[#allocation7 + $0xf4] sm:$0xf]  ;;  %v3115_v7 = vld [vmem:[#allocation7 + $0x48] sm:$0xf0]  ;;  %v4195_v9 = vld [vmem:[#allocation7 + $0x8b8] sm:$0xf0] }
  0x57   :  { %2244 = vmatpush.bf16.msra.mxu0 %v3618_v16  ;;  %v4324_v16 = vld [vmem:[#allocation7 + $0x124] sm:$0xf]  ;;  %v3214_v26 = vor.u32 %v4318_v22, %v3211_v23  ;;  %v3118_v10 = vor.u32 %v4294_v6, %v3115_v7  ;;  %v4426_v22 = vld [vmem:[#allocation7 + $0x454] sm:$0xf]  ;;  %v3643_v23 = vld [vmem:[#allocation7 + $0x468] sm:$0xf0] }
  0x58   :  { %2258 = vmatpush.bf16.msra.mxu1 %v3810_v20  ;;  %v3238_v20 = vor.u32 %v4324_v16, %v3235_v17  ;;  %v3283_v16 = vld [vmem:[#allocation7 + $0x198] sm:$0xf0]  ;;  %v4564_v6 = vld [vmem:[#allocation7 + $0x8a4] sm:$0xf]  ;;  %vm2848_vm15 = vcmask 1043456   ;;  %s4720_s2 = smov [#allocation8]  }
  0x59   :  { %2272 = vmatpush.bf16.msra.mxu2 %v4002_v31  ;;  %s2859_s6 = sshll.u32 %s4720_s2, 4  ;;  %s2861_s9 = sshll.u32 %s4901_s3, 4  ;;  %s2860_s6 = int_to_ptr.vmem [resolvable:$true] %s2859_s6  ;;  %s2862_s9 = int_to_ptr.hbm [resolvable:$true] %s2861_s9 }
  0x5a   :  { %2286 = vmatpush.bf16.msra.mxu3 %v4194_v34  ;;  %v4312_v34 = vld [vmem:[#allocation7 + $0xc4] sm:$0xf]  ;;  %s4721_s3 = smov [#allocation9]   ;;  %s2875_s13 = sshll.u32 %s4902_s4, 4  ;;  %s2876_s13 = int_to_ptr.hbm [resolvable:$true] %s2875_s13 }
  0x5b   :  { %2245 = vmatpush.bf16.msra.mxu0 %v3594_v28  ;;  %v3929_v28 = vld [vmem:[#allocation7 + $0x690] sm:$0xf]  ;;  %v3190_v37 = vor.u32 %v4312_v34, %v3187_v35  ;;  %v3646_v34 = vor.u32 %v4426_v22, %v3643_v23  ;;  %v4420_v35 = vld [vmem:[#allocation7 + $0x424] sm:$0xf]  ;;  %v4402_v22 = vld [vmem:[#allocation7 + $0x394] sm:$0xf] }
  0x5c   :  { %2259 = vmatpush.bf16.msra.mxu1 %v3786_v32  ;;  %v3930_v31 = vor.u32 %v4501_v29, %v3929_v28  ;;  %v4549_v32 = vld [vmem:[#allocation7 + $0x824] sm:$0xf0]  ;;  %v3547_v23 = vld [vmem:[#allocation7 + $0x3a8] sm:$0xf0]  ;;  %s2873_s10 = sshll.u32 %s4721_s3, 4  ;;  %s2874_s10 = int_to_ptr.vmem [resolvable:$true] %s2873_s10 }
  0x5d   :  { %2273 = vmatpush.bf16.msra.mxu2 %v3978_v43  ;;  %v4122_v33 = vor.u32 %v4549_v32, %v4121_v30  ;;  %v3835_v30 = vld [vmem:[#allocation7 + $0x5e8] sm:$0xf0] }
  0x5e   :  { %2287 = vmatpush.bf16.msra.mxu3 %v4170_v46  ;;  %v4306_v46 = vld [vmem:[#allocation7 + $0x94] sm:$0xf] }
  0x5f   :  { %2246 = vmatpush.bf16.msra.mxu0 %v3570_v41  ;;  %v3905_v41 = vld [vmem:[#allocation7 + $0x660] sm:$0xf]  ;;  %v3166_v49 = vor.u32 %v4306_v46, %v3163_v47  ;;  %v4570_v46 = vld [vmem:[#allocation7 + $0x8d4] sm:$0xf] }
  0x60   :  { %2260 = vmatpush.bf16.msra.mxu1 %v3762_v44  ;;  %v3906_v43 = vor.u32 %v4495_v38, %v3905_v41  ;;  %v4543_v44 = vld [vmem:[#allocation7 + $0x7f4] sm:$0xf0]  ;;  %v3619_v41 = vld [vmem:[#allocation7 + $0x438] sm:$0xf0]  ;;  %v4468_v38 = vld [vmem:[#allocation7 + $0x5a4] sm:$0xf] }
  0x61   :  { %2274 = vmatpush.bf16.msra.mxu2 %v3954_v53  ;;  %v4098_v45 = vor.u32 %v4543_v44, %v4097_v42  ;;  %v4489_v53 = vld [vmem:[#allocation7 + $0x644] sm:$0xf0]  ;;  %v3811_v42 = vld [vmem:[#allocation7 + $0x5b8] sm:$0xf0]  ;;  %v4522_v44 = vld [vmem:[#allocation7 + $0x754] sm:$0xf] }
  0x62   :  { %2288 = vmatpush.bf16.msra.mxu3 %v4146_v57 }
  0x63   :  { %2247 = vmatpush.bf16.msra.mxu0 %v3546_v52  ;;  %v3881_v52 = vld [vmem:[#allocation7 + $0x630] sm:$0xf] }
  0x64   :  { %2261 = vmatpush.bf16.msra.mxu1 %v3738_v54  ;;  %v4073_v54 = vld [vmem:[#allocation7 + $0x7b0] sm:$0xf]  ;;  %v3882_v55 = vor.u32 %v4489_v53, %v3881_v52  ;;  %v3622_v52 = vor.u32 %v4420_v35, %v3619_v41  ;;  %v3595_v53 = vld [vmem:[#allocation7 + $0x408] sm:$0xf0]  ;;  %v3523_v35 = vld [vmem:[#allocation7 + $0x378] sm:$0xf0] }
  0x65   :  { %2275 = vmatpush.bf16.msra.mxu2 %v3930_v31  ;;  %v4074_v57 = vor.u32 %v4537_v56, %v4073_v54  ;;  %v3814_v56 = vor.u32 %v4468_v38, %v3811_v42  ;;  %v4498_v38 = vld [vmem:[#allocation7 + $0x694] sm:$0xf] }
  0x66   :  { %2289 = vmatpush.bf16.msra.mxu3 %v4122_v33 }
  0x67   :  { %2248 = vmatpush.bf16.msra.mxu0 %v3522_v60  ;;  %v4348_v60 = vld [vmem:[#allocation7 + $0x1e4] sm:$0xf] }
  0x68   :  { %2262 = vmatpush.bf16.msra.mxu1 %v3714_v61  ;;  %v3142_v61 = vor.u32 %v4300_v58, %v3139_v59  ;;  %v3334_v63 = vor.u32 %v4348_v60, %v3331_v62  ;;  %v3787_v59 = vld [vmem:[#allocation7 + $0x588] sm:$0xf0] }
  0x69   :  { %2276 = vmatpush.bf16.msra.mxu2 %v3906_v43 }
  0x6a   :  { %2290 = vmatpush.bf16.msra.mxu3 %v4098_v45  ;;  %v4027_v45 = vld [vmem:[#allocation7 + $0x768] sm:$0xf0] }
  0x6b   :  { %2249 = vmatpush.bf16.msra.mxu0 %v3498_v2  ;;  %v4049_v2 = vld [vmem:[#allocation7 + $0x780] sm:$0xf]  ;;  %v4030_v62 = vor.u32 %v4522_v44, %v4027_v45 }
  0x6c   :  { %2263 = vmatpush.bf16.msra.mxu1 %v3690_v3  ;;  %v3858_v3 = vor.u32 %v4483_v1, %v3857_v0  ;;  %v4050_v5 = vor.u32 %v4531_v4, %v4049_v2  ;;  %v4516_v4 = vld [vmem:[#allocation7 + $0x724] sm:$0xf] }
  0x6d   :  { %2277 = vmatpush.bf16.msra.mxu2 %v3882_v55 }
  0x6e   :  { %2291 = vmatpush.bf16.msra.mxu3 %v4074_v57  ;;  %v4462_v57 = vld [vmem:[#allocation7 + $0x574] sm:$0xf] }
  0x6f   :  { %2250 = vmatpush.bf16.msra.mxu0 %v3474_v12  ;;  %v4288_v12 = vld [vmem:[#allocation7 + $0x4] sm:$0xf]  ;;  %v3790_v8 = vor.u32 %v4462_v57, %v3787_v59 }
  0x70   :  { %2264 = vmatpush.bf16.msra.mxu1 %v3666_v13  ;;  %v3091_v13 = vld [vmem:[#allocation7 + $0x18] sm:$0xf0]  ;;  %v4540_v57 = vld [vmem:[#allocation7 + $0x7e4] sm:$0xf] }
  0x71   :  { %2278 = vmatpush.bf16.msra.mxu2 %v3858_v3  ;;  %v4384_v59 = vld [vmem:[#allocation7 + $0x304] sm:$0xf] }
  0x72   :  { %2292 = vmatpush.bf16.msra.mxu3 %v4050_v5  ;;  %v4003_v5 = vld [vmem:[#allocation7 + $0x738] sm:$0xf0] }
  0x73   :  { %2299 = vmatpush.bf16.msrb.mxu0 %v3262_v14  ;;  %v3094_v14 = vor.u32 %v4288_v12, %v3091_v13  ;;  %v4456_v12 = vld [vmem:[#allocation7 + $0x544] sm:$0xf]  ;;  %v3763_v13 = vld [vmem:[#allocation7 + $0x558] sm:$0xf0] }
  0x74   :  { %2313 = vmatpush.bf16.msrb.mxu1 %v3454_v15  ;;  %v4336_v15 = vld [vmem:[#allocation7 + $0x184] sm:$0xf] }
  0x75   :  { %v3286_v17 = vor.u32 %v4336_v15, %v3283_v16  ;;  %v4198_v15 = vor.u32 %v4564_v6, %v4195_v9  ;;  %v4486_v9 = vld [vmem:[#allocation7 + $0x634] sm:$0xf] }
  0x77   :  { %2300 = vmatpush.bf16.msrb.mxu0 %v3238_v20 }
  0x78   :  { %2314 = vmatpush.bf16.msrb.mxu1 %v3430_v21 }
  0x7b   :  { %2301 = vmatpush.bf16.msrb.mxu0 %v3214_v26 }
  0x7c   :  { %2315 = vmatpush.bf16.msrb.mxu1 %v3406_v27  ;;  %v4474_v27 = vld [vmem:[#allocation7 + $0x5d4] sm:$0xf] }
  0x7f   :  { %2302 = vmatpush.bf16.msrb.mxu0 %v3190_v37 }
  0x80   :  { %2316 = vmatpush.bf16.msrb.mxu1 %v3382_v40  ;;  %v3838_v40 = vor.u32 %v4474_v27, %v3835_v30  ;;  %v3955_v30 = vld [vmem:[#allocation7 + $0x6d8] sm:$0xf0] }
  0x83   :  { %2303 = vmatpush.bf16.msrb.mxu0 %v3166_v49  ;;  %v4414_v49 = vld [vmem:[#allocation7 + $0x3f4] sm:$0xf] }
  0x84   :  { %2317 = vmatpush.bf16.msrb.mxu1 %v3358_v51  ;;  %v3598_v3 = vor.u32 %v4414_v49, %v3595_v53  ;;  %v3691_v53 = vld [vmem:[#allocation7 + $0x4c8] sm:$0xf0] }
  0x87   :  { %2304 = vmatpush.bf16.msrb.mxu0 %v3142_v61 }
  0x88   :  { %2318 = vmatpush.bf16.msrb.mxu1 %v3334_v63  ;;  %v4222_v63 = vor.u32 %v4570_v46, %v4219_v48  ;;  %v3931_v46 = vld [vmem:[#allocation7 + $0x6a8] sm:$0xf0] }
  0x89   :  { %v4123_v48 = vld [vmem:[#allocation7 + $0x828] sm:$0xf0] }
  0x8b   :  { %2305 = vmatpush.bf16.msrb.mxu0 %v3118_v10  ;;  %v4408_v10 = vld [vmem:[#allocation7 + $0x3c4] sm:$0xf] }
  0x8c   :  { %2319 = vmatpush.bf16.msrb.mxu1 %v3310_v11  ;;  %v3571_v11 = vld [vmem:[#allocation7 + $0x3d8] sm:$0xf0] }
  0x8d   :  { %v3574_v16 = vor.u32 %v4408_v10, %v3571_v11 }
  0x8f   :  { %2306 = vmatpush.bf16.msrb.mxu0 %v3094_v14  ;;  %v4006_v14 = vor.u32 %v4516_v4, %v4003_v5  ;;  %v4334_v4 = vld [vmem:[#allocation7 + $0x16c] sm:$0xf0]  ;;  %v3457_v5 = vld [vmem:[#allocation7 + $0x2d8] sm:$0xf] }
  0x90   :  { %2320 = vmatpush.bf16.msrb.mxu1 %v3286_v17  ;;  %v4510_v17 = vld [vmem:[#allocation7 + $0x6f4] sm:$0xf] }
  0xaf   :  { %v370_v18 = vpop.f32.mrf.mxu0 }
  0xb0   :  { %v384_v19 = vpop.f32.mrf.mxu1  ;;  %v457_v20 = vmul.f32 0.2, %v370_v18  ;;  %vm445_vm0 = vcmp.gt.f32.partialorder %v370_v18, 0.0 }
  0xb1   :  { %v458_v24 = vmul.f32 0.2, %v384_v19  ;;  %vm446_vm1 = vcmp.gt.f32.partialorder %v384_v19, 0.0 }
  0xb2   :  { %v469_v32 = vsel %vm445_vm0, %v370_v18, %v457_v20  ;;  %v3979_v18 = vld [vmem:[#allocation7 + $0x708] sm:$0xf0]  ;;  %v3766_v20 = vor.u32 %v4456_v12, %v3763_v13 }
  0xb3   :  { %v470_v36 = vsel %vm446_vm1, %v384_v19, %v458_v24  ;;  %v4558_v19 = vld [vmem:[#allocation7 + $0x874] sm:$0xf] }
  0xb4   :  { %v4450_v24 = vld [vmem:[#allocation7 + $0x514] sm:$0xf] }
  0xb7   :  { %v398_v21 = vpop.f32.mrf.mxu2  ;;  %v372_v26 = vpop.f32.mrf.mxu0 }
  0xb8   :  { %v412_v25 = vpop.f32.mrf.mxu3  ;;  %vm451_vm2 = vcmp.gt.f32.partialorder %v372_v26, 0.0  ;;  %v463_v28 = vmul.f32 0.2, %v372_v26  ;;  %v386_v29 = vpop.f32.mrf.mxu1  ;;  %v459_v47 = vmul.f32 0.2, %v398_v21  ;;  %vm447_vm4 = vcmp.gt.f32.partialorder %v398_v21, 0.0 }
  0xb9   :  { %vm452_vm3 = vcmp.gt.f32.partialorder %v386_v29, 0.0  ;;  %v464_v31 = vmul.f32 0.2, %v386_v29  ;;  %v460_v50 = vmul.f32 0.2, %v412_v25  ;;  %vm448_vm5 = vcmp.gt.f32.partialorder %v412_v25, 0.0 }
  0xba   :  { %v475_v33 = vsel %vm451_vm2, %v372_v26, %v463_v28  ;;  %v471_v60 = vsel %vm447_vm4, %v398_v21, %v459_v47  ;;  %v4171_v21 = vld [vmem:[#allocation7 + $0x888] sm:$0xf0]  ;;  %v3982_v26 = vor.u32 %v4510_v17, %v3979_v18  ;;  %v3550_v28 = vor.u32 %v4402_v22, %v3547_v23  ;;  %v4546_v47 = vld [vmem:[#allocation7 + $0x814] sm:$0xf] }
  0xbb   :  { %v4770_v37 = vpack.c.bf16 %v475_v33, %v469_v32  ;;  %v476_v39 = vsel %vm452_vm3, %v386_v29, %v464_v31  ;;  %v472_v0 = vsel %vm448_vm5, %v412_v25, %v460_v50  ;;  %v3739_v25 = vld [vmem:[#allocation7 + $0x528] sm:$0xf0]  ;;  %v4174_v27 = vor.u32 %v4558_v19, %v4171_v21  ;;  %v4504_v29 = vld [vmem:[#allocation7 + $0x6c4] sm:$0xf]  ;;  %v4147_v33 = vld [vmem:[#allocation7 + $0x858] sm:$0xf0] }
  0xbc   :  { %v4772_v43 = vpack.c.bf16 %v476_v39, %v470_v36  ;;  %v4552_v31 = vld [vmem:[#allocation7 + $0x844] sm:$0xf]  ;;  %v3742_v32 = vor.u32 %v4450_v24, %v3739_v25  ;;  %v3715_v39 = vld [vmem:[#allocation7 + $0x4f8] sm:$0xf0]  ;;  %v3958_v41 = vor.u32 %v4504_v29, %v3955_v30  ;;  %v4390_v50 = vld [vmem:[#allocation7 + $0x334] sm:$0xf] }
  0xbd   :  { %2223 = vmatmul.bf16.vlgmr.msrb.gmra.mxu2 %v4770_v37  ;;  %v4444_v36 = vld [vmem:[#allocation7 + $0x4e4] sm:$0xf]  ;;  %v4150_v44 = vor.u32 %v4552_v31, %v4147_v33  ;;  %v4534_v18 = vld [vmem:[#allocation7 + $0x7b4] sm:$0xf]  ;;  %v4075_v21 = vld [vmem:[#allocation7 + $0x7c8] sm:$0xf0] }
  0xbe   :  { %2237 = vmatmul.bf16.vlgmr.msrb.gmra.mxu3 %v4772_v43  ;;  %2327 = vmatpush.bf16.msrb.mxu2 %v3646_v34  ;;  %v4396_v34 = vld [vmem:[#allocation7 + $0x364] sm:$0xf]  ;;  %v3718_v49 = vor.u32 %v4444_v36, %v3715_v39  ;;  %v4328_v31 = vld [vmem:[#allocation7 + $0x13c] sm:$0xf0]  ;;  %v3859_v39 = vld [vmem:[#allocation7 + $0x618] sm:$0xf0] }
  0xbf   :  { %v400_v51 = vpop.f32.mrf.mxu2  ;;  %2341 = vmatpush.bf16.msrb.mxu3 %v3838_v40  ;;  %v3526_v45 = vor.u32 %v4396_v34, %v3523_v35  ;;  %v4376_v33 = vld [vmem:[#allocation7 + $0x2bc] sm:$0xf0]  ;;  %v4078_v35 = vor.u32 %v4534_v18, %v4075_v21  ;;  %v4480_v36 = vld [vmem:[#allocation7 + $0x604] sm:$0xf]  ;;  %v3577_v18 = vld [vmem:[#allocation7 + $0x3c8] sm:$0xf] }
  0xc0   :  { %vm453_vm6 = vcmp.gt.f32.partialorder %v400_v51, 0.0  ;;  %v465_v54 = vmul.f32 0.2, %v400_v51  ;;  %v414_v55 = vpop.f32.mrf.mxu3  ;;  %v3769_v21 = vld [vmem:[#allocation7 + $0x548] sm:$0xf] }
  0xc1   :  { %vm454_vm7 = vcmp.gt.f32.partialorder %v414_v55, 0.0  ;;  %v466_v58 = vmul.f32 0.2, %v414_v55 }
  0xc2   :  { %v477_v61 = vsel %vm453_vm6, %v400_v51, %v465_v54  ;;  %2328 = vmatpush.bf16.msrb.mxu2 %v3622_v52  ;;  %v3499_v51 = vld [vmem:[#allocation7 + $0x348] sm:$0xf0]  ;;  %v4438_v52 = vld [vmem:[#allocation7 + $0x4b4] sm:$0xf]  ;;  %v4492_v54 = vld [vmem:[#allocation7 + $0x664] sm:$0xf] }
  0xc3   :  { %v4777_v1 = vpack.c.bf16 %v477_v61, %v471_v60  ;;  %v478_v2 = vsel %vm454_vm7, %v414_v55, %v466_v58  ;;  %2342 = vmatpush.bf16.msrb.mxu3 %v3814_v56  ;;  %v3907_v55 = vld [vmem:[#allocation7 + $0x678] sm:$0xf0]  ;;  %v3934_v56 = vor.u32 %v4498_v38, %v3931_v46  ;;  %v4126_v60 = vor.u32 %v4546_v47, %v4123_v48  ;;  %v3649_v38 = vld [vmem:[#allocation7 + $0x458] sm:$0xf]  ;;  %v4478_v46 = vld [vmem:[#allocation7 + $0x5ec] sm:$0xf0] }
  0xc4   :  { %v4779_v7 = vpack.c.bf16 %v478_v2, %v472_v0  ;;  %v4099_v58 = vld [vmem:[#allocation7 + $0x7f8] sm:$0xf0]  ;;  %v3502_v61 = vor.u32 %v4390_v50, %v3499_v51  ;;  %v3694_v2 = vor.u32 %v4438_v52, %v3691_v53  ;;  %v3910_v12 = vor.u32 %v4492_v54, %v3907_v55  ;;  %v4322_v50 = vld [vmem:[#allocation7 + $0x10c] sm:$0xf0]  ;;  %v3409_v53 = vld [vmem:[#allocation7 + $0x278] sm:$0xf] }
  0xc5   :  { %2251 = vmatmul.bf16.vlgmr.msra.gmra.mxu0 %v4777_v1  ;;  %v3667_v0 = vld [vmem:[#allocation7 + $0x498] sm:$0xf0]  ;;  %v4102_v13 = vor.u32 %v4540_v57, %v4099_v58  ;;  %v3862_v48 = vor.u32 %v4480_v36, %v3859_v39  ;;  %v4370_v54 = vld [vmem:[#allocation7 + $0x28c] sm:$0xf0]  ;;  %v4424_v57 = vld [vmem:[#allocation7 + $0x43c] sm:$0xf0] }
  0xc6   :  { %2265 = vmatmul.bf16.vlgmr.msra.gmra.mxu1 %v4779_v7  ;;  %2355 = vmatpush.bf16.msra.mxu0 %v4030_v62  ;;  %v3475_v62 = vld [vmem:[#allocation7 + $0x318] sm:$0xf0]  ;;  %v4454_v36 = vld [vmem:[#allocation7 + $0x52c] sm:$0xf0] }
  0xc7   :  { %2369 = vmatpush.bf16.msra.mxu1 %v4222_v63  ;;  %2329 = vmatpush.bf16.msrb.mxu2 %v3598_v3  ;;  %v4432_v63 = vld [vmem:[#allocation7 + $0x484] sm:$0xf]  ;;  %v3265_v3 = vld [vmem:[#allocation7 + $0x158] sm:$0xf]  ;;  %v3478_v17 = vor.u32 %v4384_v59, %v3475_v62  ;;  %v3817_v59 = vld [vmem:[#allocation7 + $0x5a8] sm:$0xf] }
  0xc8   :  { %2343 = vmatpush.bf16.msrb.mxu3 %v3790_v8  ;;  %v4382_v8 = vld [vmem:[#allocation7 + $0x2ec] sm:$0xf0]  ;;  %v3266_v24 = vor.u32 %v4334_v4, %v3265_v3  ;;  %v3193_v62 = vld [vmem:[#allocation7 + $0xc8] sm:$0xf]  ;;  %v4364_v3 = vld [vmem:[#allocation7 + $0x25c] sm:$0xf0] }
  0xc9   :  { %v3458_v25 = vor.u32 %v4382_v8, %v3457_v5  ;;  %v3601_v5 = vld [vmem:[#allocation7 + $0x3f8] sm:$0xf] }
  0xca   :  { %2356 = vmatpush.bf16.msra.mxu0 %v4006_v14  ;;  %v3883_v14 = vld [vmem:[#allocation7 + $0x648] sm:$0xf0] }
  0xcb   :  { %2370 = vmatpush.bf16.msra.mxu1 %v4198_v15  ;;  %2330 = vmatpush.bf16.msrb.mxu2 %v3574_v16  ;;  %v3886_v30 = vor.u32 %v4486_v9, %v3883_v14  ;;  %v3793_v9 = vld [vmem:[#allocation7 + $0x578] sm:$0xf] }
  0xcc   :  { %2344 = vmatpush.bf16.msrb.mxu3 %v3766_v20  ;;  %v3670_v20 = vor.u32 %v4432_v63, %v3667_v0  ;;  %v4316_v63 = vld [vmem:[#allocation7 + $0xdc] sm:$0xf0] }
  0xcd   :  { %v3194_v8 = vor.u32 %v4316_v63, %v3193_v62  ;;  %v3505_v62 = vld [vmem:[#allocation7 + $0x338] sm:$0xf]  ;;  %v4394_v63 = vld [vmem:[#allocation7 + $0x34c] sm:$0xf0] }
  0xce   :  { %2357 = vmatpush.bf16.msra.mxu0 %v3982_v26  ;;  %v3241_v26 = vld [vmem:[#allocation7 + $0x128] sm:$0xf] }
  0xcf   :  { %v426_v40 = vpop.f32.mrf.mxu0  ;;  %2371 = vmatpush.bf16.msra.mxu1 %v4174_v27  ;;  %2331 = vmatpush.bf16.msrb.mxu2 %v3550_v28 }
  0xd0   :  { %v4783_v42 = vpop.f32.mrf.mxu1  ;;  %2345 = vmatpush.bf16.msrb.mxu3 %v3742_v32  ;;  %v461_v6 = vmul.f32 0.2, %v426_v40  ;;  %vm449_vm8 = vcmp.gt.f32.partialorder %v426_v40, 0.0  ;;  %v3433_v32 = vld [vmem:[#allocation7 + $0x2a8] sm:$0xf] }
  0xd1   :  { %v462_v10 = vmul.f32 0.2, %v4783_v42  ;;  %vm450_vm9 = vcmp.gt.f32.partialorder %v4783_v42, 0.0  ;;  %v3434_v47 = vor.u32 %v4376_v33, %v3433_v32  ;;  %v4406_v32 = vld [vmem:[#allocation7 + $0x3ac] sm:$0xf0] }
  0xd2   :  { %2358 = vmatpush.bf16.msra.mxu0 %v3958_v41  ;;  %v473_v22 = vsel %vm449_vm8, %v426_v40, %v461_v6  ;;  %v4528_v40 = vld [vmem:[#allocation7 + $0x784] sm:$0xf]  ;;  %v4051_v41 = vld [vmem:[#allocation7 + $0x798] sm:$0xf0]  ;;  %v4418_v6 = vld [vmem:[#allocation7 + $0x40c] sm:$0xf0] }
  0xd3   :  { %2372 = vmatpush.bf16.msra.mxu1 %v4150_v44  ;;  %2332 = vmatpush.bf16.msrb.mxu2 %v3526_v45  ;;  %v474_v27 = vsel %vm450_vm9, %v4783_v42, %v462_v10  ;;  %v4430_v42 = vld [vmem:[#allocation7 + $0x46c] sm:$0xf0]  ;;  %v3242_v44 = vor.u32 %v4328_v31, %v3241_v26  ;;  %v3841_v45 = vld [vmem:[#allocation7 + $0x5d8] sm:$0xf]  ;;  %v4054_v51 = vor.u32 %v4528_v40, %v4051_v41 }
  0xd4   :  { %2346 = vmatpush.bf16.msrb.mxu3 %v3718_v49  ;;  %v3217_v49 = vld [vmem:[#allocation7 + $0xf8] sm:$0xf]  ;;  %v3650_v52 = vor.u32 %v4430_v42, %v3649_v38  ;;  %v3842_v55 = vor.u32 %v4478_v46, %v3841_v45  ;;  %v4466_v10 = vld [vmem:[#allocation7 + $0x58c] sm:$0xf0]  ;;  %v3602_v14 = vor.u32 %v4418_v6, %v3601_v5  ;;  %v3529_v46 = vld [vmem:[#allocation7 + $0x368] sm:$0xf] }
  0xd5   :  { %2307 = vmatmul.bf16.vlgmr.msrb.gmra.mxu0 %v4770_v37  ;;  %v3218_v58 = vor.u32 %v4322_v50, %v3217_v49  ;;  %v3553_v31 = vld [vmem:[#allocation7 + $0x398] sm:$0xf]  ;;  %v4298_v41 = vld [vmem:[#allocation7 + $0x4c] sm:$0xf0]  ;;  %v3721_v49 = vld [vmem:[#allocation7 + $0x4e8] sm:$0xf] }
  0xd6   :  { %2321 = vmatmul.bf16.vlgmr.msrb.gmra.mxu1 %v4772_v43  ;;  %2359 = vmatpush.bf16.msra.mxu0 %v3934_v56  ;;  %v3625_v56 = vld [vmem:[#allocation7 + $0x428] sm:$0xf]  ;;  %v3121_v40 = vld [vmem:[#allocation7 + $0x38] sm:$0xf]  ;;  %v3554_v38 = vor.u32 %v4406_v32, %v3553_v31  ;;  %v4448_v50 = vld [vmem:[#allocation7 + $0x4fc] sm:$0xf0] }
  0xd7   :  { %v428_v11 = vpop.f32.mrf.mxu0  ;;  %2373 = vmatpush.bf16.msra.mxu1 %v4126_v60  ;;  %2333 = vmatpush.bf16.msrb.mxu2 %v3502_v61  ;;  %v4472_v60 = vld [vmem:[#allocation7 + $0x5bc] sm:$0xf0]  ;;  %v3410_v61 = vor.u32 %v4370_v54, %v3409_v53  ;;  %v3626_v0 = vor.u32 %v4424_v57, %v3625_v56  ;;  %v3313_v42 = vld [vmem:[#allocation7 + $0x1b8] sm:$0xf]  ;;  %v3289_v54 = vld [vmem:[#allocation7 + $0x188] sm:$0xf] }
  0xd8   :  { %vm455_vm10 = vcmp.gt.f32.partialorder %v428_v11, 0.0  ;;  %v467_v15 = vmul.f32 0.2, %v428_v11  ;;  %v442_v16 = vpop.f32.mrf.mxu1  ;;  %2347 = vmatpush.bf16.msrb.mxu3 %v3694_v2  ;;  %v3385_v2 = vld [vmem:[#allocation7 + $0x248] sm:$0xf]  ;;  %v3818_v4 = vor.u32 %v4472_v60, %v3817_v59  ;;  %v3722_v60 = vor.u32 %v4448_v50, %v3721_v49 }
  0xd9   :  { %vm456_vm11 = vcmp.gt.f32.partialorder %v442_v16, 0.0  ;;  %v468_v19 = vmul.f32 0.2, %v442_v16  ;;  %v4292_v53 = vld [vmem:[#allocation7 + $0x1c] sm:$0xf0] }
  0xda   :  { %v479_v23 = vsel %vm455_vm10, %v428_v11, %v467_v15  ;;  %2360 = vmatpush.bf16.msra.mxu0 %v3910_v12  ;;  %v3386_v11 = vor.u32 %v4364_v3, %v3385_v2  ;;  %v3169_v12 = vld [vmem:[#allocation7 + $0x98] sm:$0xf]  ;;  %v4442_v3 = vld [vmem:[#allocation7 + $0x4cc] sm:$0xf0]  ;;  %v4009_v6 = vld [vmem:[#allocation7 + $0x728] sm:$0xf] }
  0xdb   :  { %v4793_v28 = vpack.c.bf16 %v479_v23, %v473_v22  ;;  %v480_v29 = vsel %vm456_vm11, %v442_v16, %v468_v19  ;;  %2374 = vmatpush.bf16.msra.mxu1 %v4102_v13  ;;  %2334 = vmatpush.bf16.msrb.mxu2 %v3478_v17  ;;  %v4310_v13 = vld [vmem:[#allocation7 + $0xac] sm:$0xf0]  ;;  %v3361_v15 = vld [vmem:[#allocation7 + $0x218] sm:$0xf]  ;;  %v3794_v17 = vor.u32 %v4466_v10, %v3793_v9  ;;  %v4412_v19 = vld [vmem:[#allocation7 + $0x3dc] sm:$0xf0] }
  0xdc   :  { %v4795_v34 = vpack.c.bf16 %v480_v29, %v474_v27  ;;  %2348 = vmatpush.bf16.msrb.mxu3 %v3670_v20  ;;  %v4358_v16 = vld [vmem:[#allocation7 + $0x22c] sm:$0xf0]  ;;  %v3170_v20 = vor.u32 %v4310_v13, %v3169_v12  ;;  %v4460_v22 = vld [vmem:[#allocation7 + $0x55c] sm:$0xf0]  ;;  %v3578_v26 = vor.u32 %v4412_v19, %v3577_v18  ;;  %v3337_v27 = vld [vmem:[#allocation7 + $0x1e8] sm:$0xf]  ;;  %v3506_v9 = vor.u32 %v4394_v63, %v3505_v62 }
  0xdd   :  { %2279 = vmatmul.bf16.vlgmr.msra.gmra.mxu2 %v4793_v28  ;;  %v3362_v23 = vor.u32 %v4358_v16, %v3361_v15  ;;  %v4352_v29 = vld [vmem:[#allocation7 + $0x1fc] sm:$0xf0]  ;;  %v4033_v57 = vld [vmem:[#allocation7 + $0x758] sm:$0xf]  ;;  %v3673_v16 = vld [vmem:[#allocation7 + $0x488] sm:$0xf] }
  0xde   :  { %2293 = vmatmul.bf16.vlgmr.msra.gmra.mxu3 %v4795_v34  ;;  %2361 = vmatpush.bf16.msra.mxu0 %v3886_v30  ;;  %v3770_v30 = vor.u32 %v4460_v22, %v3769_v21  ;;  %v3338_v39 = vor.u32 %v4352_v29, %v3337_v27  ;;  %v4225_v59 = vld [vmem:[#allocation7 + $0x8d8] sm:$0xf]  ;;  %v4520_v10 = vld [vmem:[#allocation7 + $0x73c] sm:$0xf0]  ;;  %v4331_v18 = vld [vmem:[#allocation7 + $0x15c] sm:$0xf] }
  0xdf   :  { %2383 = vmatpush.bf16.msra.mxu2 %v3266_v24  ;;  %2375 = vmatpush.bf16.msra.mxu1 %v4078_v35  ;;  %v3145_v24 = vld [vmem:[#allocation7 + $0x68] sm:$0xf]  ;;  %v3745_v35 = vld [vmem:[#allocation7 + $0x518] sm:$0xf]  ;;  %v4568_v12 = vld [vmem:[#allocation7 + $0x8bc] sm:$0xf0] }
  0xe0   :  { %2397 = vmatpush.bf16.msra.mxu3 %v3458_v25  ;;  %v4304_v25 = vld [vmem:[#allocation7 + $0x7c] sm:$0xf0]  ;;  %v3746_v45 = vor.u32 %v4454_v36, %v3745_v35  ;;  %v3697_v2 = vld [vmem:[#allocation7 + $0x4b8] sm:$0xf]  ;;  %v3267_v19 = vld [vmem:[#allocation7 + $0x170] sm:$0xf0] }
  0xe1   :  { %v3146_v33 = vor.u32 %v4304_v25, %v3145_v24  ;;  %v3698_v13 = vor.u32 %v4442_v3, %v3697_v2  ;;  %v4388_v15 = vld [vmem:[#allocation7 + $0x31c] sm:$0xf0]  ;;  %v4379_v21 = vld [vmem:[#allocation7 + $0x2dc] sm:$0xf]  ;;  %v3459_v22 = vld [vmem:[#allocation7 + $0x2f0] sm:$0xf0]  ;;  %v3270_v29 = vor.u32 %v4331_v18, %v3267_v19 }
  0xe2   :  { %2362 = vmatpush.bf16.msra.mxu0 %v3862_v48  ;;  %v3122_v48 = vor.u32 %v4298_v41, %v3121_v40  ;;  %v3985_v25 = vld [vmem:[#allocation7 + $0x6f8] sm:$0xf]  ;;  %v4562_v31 = vld [vmem:[#allocation7 + $0x88c] sm:$0xf0]  ;;  %v3462_v32 = vor.u32 %v4379_v21, %v3459_v22  ;;  %v3243_v35 = vld [vmem:[#allocation7 + $0x140] sm:$0xf0] }
  0xe3   :  { %2384 = vmatpush.bf16.msra.mxu2 %v3242_v44  ;;  %2376 = vmatpush.bf16.msra.mxu1 %v4054_v51  ;;  %v4346_v44 = vld [vmem:[#allocation7 + $0x1cc] sm:$0xf0]  ;;  %v3097_v51 = vld [vmem:[#allocation7 + $0x8] sm:$0xf]  ;;  %v3435_v40 = vld [vmem:[#allocation7 + $0x2c0] sm:$0xf0] }
  0xe4   :  { %2398 = vmatpush.bf16.msra.mxu3 %v3434_v47  ;;  %v4400_v47 = vld [vmem:[#allocation7 + $0x37c] sm:$0xf0]  ;;  %v3219_v49 = vld [vmem:[#allocation7 + $0x110] sm:$0xf0]  ;;  %v4361_v63 = vld [vmem:[#allocation7 + $0x24c] sm:$0xf] }
  0xe5   :  { %2363 = vmatmul.bf16.vlgmr.msra.gmra.mxu0 %v4793_v28  ;;  %v3530_v56 = vor.u32 %v4400_v47, %v3529_v46  ;;  %v4556_v46 = vld [vmem:[#allocation7 + $0x85c] sm:$0xf0]  ;;  %v3913_v3 = vld [vmem:[#allocation7 + $0x668] sm:$0xf]  ;;  %v4081_v19 = vld [vmem:[#allocation7 + $0x7b8] sm:$0xf] }
  0xe6   :  { %2411 = vmatpush.bf16.msrb.mxu0 %v3650_v52  ;;  %2377 = vmatmul.bf16.vlgmr.msra.gmra.mxu1 %v4795_v34  ;;  %v3314_v52 = vor.u32 %v4346_v44, %v3313_v42  ;;  %v4508_v42 = vld [vmem:[#allocation7 + $0x6dc] sm:$0xf0]  ;;  %v4301_v22 = vld [vmem:[#allocation7 + $0x6c] sm:$0xf] }
  0xe7   :  { %2425 = vmatpush.bf16.msrb.mxu1 %v3842_v55  ;;  %2385 = vmatpush.bf16.msra.mxu2 %v3218_v58  ;;  %v4340_v55 = vld [vmem:[#allocation7 + $0x19c] sm:$0xf0]  ;;  %v4526_v58 = vld [vmem:[#allocation7 + $0x76c] sm:$0xf0] }
  0xe8   :  { %2399 = vmatpush.bf16.msra.mxu3 %v3410_v61  ;;  %v4574_v61 = vld [vmem:[#allocation7 + $0x8ec] sm:$0xf0]  ;;  %v4034_v5 = vor.u32 %v4526_v58, %v4033_v57  ;;  %v4129_v57 = vld [vmem:[#allocation7 + $0x818] sm:$0xf] }
  0xe9   :  { %v4550_v58 = vld [vmem:[#allocation7 + $0x82c] sm:$0xf0] }
  0xea   :  { %2412 = vmatpush.bf16.msrb.mxu0 %v3626_v0  ;;  %v3098_v0 = vor.u32 %v4292_v53, %v3097_v51  ;;  %v4367_v51 = vld [vmem:[#allocation7 + $0x27c] sm:$0xf]  ;;  %v4130_v2 = vor.u32 %v4550_v58, %v4129_v57  ;;  %v3099_v57 = vld [vmem:[#allocation7 + $0x20] sm:$0xf0]  ;;  %v4337_v58 = vld [vmem:[#allocation7 + $0x18c] sm:$0xf] }
  0xeb   :  { %2426 = vmatpush.bf16.msrb.mxu1 %v3818_v4  ;;  %2386 = vmatpush.bf16.msra.mxu2 %v3194_v8  ;;  %v3290_v4 = vor.u32 %v4340_v55, %v3289_v54  ;;  %v4226_v8 = vor.u32 %v4574_v61, %v4225_v59  ;;  %v3937_v54 = vld [vmem:[#allocation7 + $0x698] sm:$0xf]  ;;  %v4502_v55 = vld [vmem:[#allocation7 + $0x6ac] sm:$0xf0]  ;;  %v3195_v61 = vld [vmem:[#allocation7 + $0xe0] sm:$0xf0] }
  0xec   :  { %2400 = vmatpush.bf16.msra.mxu3 %v3386_v11  ;;  %v4201_v11 = vld [vmem:[#allocation7 + $0x8a8] sm:$0xf]  ;;  %v3938_v62 = vor.u32 %v4502_v55, %v3937_v54  ;;  %v3819_v54 = vld [vmem:[#allocation7 + $0x5c0] sm:$0xf0] }
  0xed   :  { %2335 = vmatmul.bf16.vlgmr.msrb.gmra.mxu2 %v4777_v1 }
  0xee   :  { %2413 = vmatpush.bf16.msrb.mxu0 %v3602_v14  ;;  %2349 = vmatmul.bf16.vlgmr.msrb.gmra.mxu3 %v4779_v7  ;;  %v3481_v14 = vld [vmem:[#allocation7 + $0x308] sm:$0xf] }
  0xef   :  { %2427 = vmatpush.bf16.msrb.mxu1 %v3794_v17  ;;  %2387 = vmatpush.bf16.msra.mxu2 %v3170_v20  ;;  %v4436_v17 = vld [vmem:[#allocation7 + $0x49c] sm:$0xf0]  ;;  %v4010_v20 = vor.u32 %v4520_v10, %v4009_v6  ;;  %v3482_v24 = vor.u32 %v4388_v15, %v3481_v14  ;;  %v4105_v6 = vld [vmem:[#allocation7 + $0x7e8] sm:$0xf]  ;;  %v4307_v10 = vld [vmem:[#allocation7 + $0x9c] sm:$0xf] }
  0xf0   :  { %2401 = vmatpush.bf16.msra.mxu3 %v3362_v23  ;;  %v4202_v23 = vor.u32 %v4568_v12, %v4201_v11  ;;  %v3674_v27 = vor.u32 %v4436_v17, %v3673_v16  ;;  %v3171_v11 = vld [vmem:[#allocation7 + $0xb0] sm:$0xf0]  ;;  %v3889_v16 = vld [vmem:[#allocation7 + $0x638] sm:$0xf]  ;;  %v4490_v17 = vld [vmem:[#allocation7 + $0x64c] sm:$0xf0] }
  0xf1   :  { %v3363_v14 = vld [vmem:[#allocation7 + $0x230] sm:$0xf0]  ;;  %v3174_v18 = vor.u32 %v4307_v10, %v3171_v11 }
  0xf2   :  { %2414 = vmatpush.bf16.msrb.mxu0 %v3578_v26  ;;  %v4514_v26 = vld [vmem:[#allocation7 + $0x70c] sm:$0xf0]  ;;  %v3795_v10 = vld [vmem:[#allocation7 + $0x590] sm:$0xf0] }
  0xf3   :  { %2428 = vmatpush.bf16.msrb.mxu1 %v3770_v30  ;;  %2388 = vmatpush.bf16.msra.mxu2 %v3146_v33  ;;  %v4177_v30 = vld [vmem:[#allocation7 + $0x878] sm:$0xf]  ;;  %v4325_v33 = vld [vmem:[#allocation7 + $0x12c] sm:$0xf]  ;;  %v3986_v36 = vor.u32 %v4514_v26, %v3985_v25  ;;  %v3339_v26 = vld [vmem:[#allocation7 + $0x200] sm:$0xf0] }
  0xf4   :  { %2402 = vmatpush.bf16.msra.mxu3 %v3338_v39  ;;  %v4373_v39 = vld [vmem:[#allocation7 + $0x2ac] sm:$0xf]  ;;  %v4178_v41 = vor.u32 %v4562_v31, %v4177_v30  ;;  %v3246_v44 = vor.u32 %v4325_v33, %v3243_v35  ;;  %v4484_v30 = vld [vmem:[#allocation7 + $0x61c] sm:$0xf0]  ;;  %v4057_v31 = vld [vmem:[#allocation7 + $0x788] sm:$0xf] }
  0xf5   :  { %v3438_v47 = vor.u32 %v4373_v39, %v3435_v40  ;;  %v4349_v25 = vld [vmem:[#allocation7 + $0x1ec] sm:$0xf]  ;;  %v4427_v35 = vld [vmem:[#allocation7 + $0x45c] sm:$0xf] }
  0xf6   :  { %2415 = vmatpush.bf16.msrb.mxu0 %v3554_v38  ;;  %v3961_v38 = vld [vmem:[#allocation7 + $0x6c8] sm:$0xf]  ;;  %v4475_v39 = vld [vmem:[#allocation7 + $0x5dc] sm:$0xf]  ;;  %v3342_v40 = vor.u32 %v4349_v25, %v3339_v26  ;;  %v3987_v25 = vld [vmem:[#allocation7 + $0x710] sm:$0xf0] }
  0xf7   :  { %2429 = vmatpush.bf16.msrb.mxu1 %v3746_v45  ;;  %2389 = vmatpush.bf16.msra.mxu2 %v3122_v48  ;;  %v4153_v45 = vld [vmem:[#allocation7 + $0x848] sm:$0xf]  ;;  %v4319_v48 = vld [vmem:[#allocation7 + $0xfc] sm:$0xf]  ;;  %v3962_v50 = vor.u32 %v4508_v42, %v3961_v38  ;;  %v3123_v42 = vld [vmem:[#allocation7 + $0x50] sm:$0xf0] }
  0xf8   :  { %2403 = vmatpush.bf16.msra.mxu3 %v3314_v52  ;;  %v3411_v52 = vld [vmem:[#allocation7 + $0x290] sm:$0xf0]  ;;  %v4154_v53 = vor.u32 %v4556_v46, %v4153_v45  ;;  %v4295_v38 = vld [vmem:[#allocation7 + $0x3c] sm:$0xf] }
  0xf9   :  { %v3414_v59 = vor.u32 %v4367_v51, %v3411_v52  ;;  %v4343_v45 = vld [vmem:[#allocation7 + $0x1bc] sm:$0xf]  ;;  %v3315_v46 = vld [vmem:[#allocation7 + $0x1d0] sm:$0xf0]  ;;  %v3126_v51 = vor.u32 %v4295_v38, %v3123_v42  ;;  %v3627_v52 = vld [vmem:[#allocation7 + $0x440] sm:$0xf0] }
  0xfa   :  { %2416 = vmatpush.bf16.msrb.mxu0 %v3530_v56  ;;  %v3222_v56 = vor.u32 %v4319_v48, %v3219_v49  ;;  %v4421_v49 = vld [vmem:[#allocation7 + $0x42c] sm:$0xf]  ;;  %v3318_v55 = vor.u32 %v4343_v45, %v3315_v46 }
  0xfb   :  { %2430 = vmatpush.bf16.msrb.mxu1 %v3722_v60  ;;  %2390 = vmatpush.bf16.msra.mxu2 %v3098_v0  ;;  %v4313_v60 = vld [vmem:[#allocation7 + $0xcc] sm:$0xf]  ;;  %v3387_v0 = vld [vmem:[#allocation7 + $0x260] sm:$0xf0] }
  0xfc   :  { %2404 = vmatpush.bf16.msra.mxu3 %v3290_v4  ;;  %v4496_v4 = vld [vmem:[#allocation7 + $0x67c] sm:$0xf0]  ;;  %v4553_v42 = vld [vmem:[#allocation7 + $0x84c] sm:$0xf] }
  0xfd   :  { %v3914_v12 = vor.u32 %v4496_v4, %v3913_v3  ;;  %v4415_v4 = vld [vmem:[#allocation7 + $0x3fc] sm:$0xf]  ;;  %v4397_v46 = vld [vmem:[#allocation7 + $0x36c] sm:$0xf] }
  0xfe   :  { %2417 = vmatpush.bf16.msrb.mxu0 %v3506_v9  ;;  %2391 = vmatmul.bf16.vlgmr.msra.gmra.mxu2 %v4770_v37  ;;  %v3390_v9 = vor.u32 %v4361_v63, %v3387_v0  ;;  %v4571_v63 = vld [vmem:[#allocation7 + $0x8dc] sm:$0xf]  ;;  %v4227_v0 = vld [vmem:[#allocation7 + $0x8f0] sm:$0xf0] }
  0xff   :  { %2439 = vmatpush.bf16.msrb.mxu2 %v4034_v5  ;;  %2431 = vmatpush.bf16.msrb.mxu1 %v3698_v13  ;;  %v3198_v5 = vor.u32 %v4313_v60, %v3195_v61  ;;  %v4355_v13 = vld [vmem:[#allocation7 + $0x21c] sm:$0xf]  ;;  %v4035_v61 = vld [vmem:[#allocation7 + $0x770] sm:$0xf0]  ;;  %v4230_v11 = vor.u32 %v4571_v63, %v4227_v0  ;;  %v4493_v0 = vld [vmem:[#allocation7 + $0x66c] sm:$0xf] }
 0x100   :  { %2453 = vmatpush.bf16.msrb.mxu3 %v4226_v8  ;;  %v4544_v8 = vld [vmem:[#allocation7 + $0x7fc] sm:$0xf0]  ;;  %v3366_v21 = vor.u32 %v4355_v13, %v3363_v14  ;;  %v4523_v60 = vld [vmem:[#allocation7 + $0x75c] sm:$0xf]  ;;  %v4011_v13 = vld [vmem:[#allocation7 + $0x740] sm:$0xf0] }
 0x101   :  { %2405 = vmatmul.bf16.vlgmr.msra.gmra.mxu3 %v4772_v43  ;;  %v4106_v15 = vor.u32 %v4544_v8, %v4105_v6  ;;  %v4038_v8 = vor.u32 %v4523_v60, %v4035_v61  ;;  %v4439_v61 = vld [vmem:[#allocation7 + $0x4bc] sm:$0xf] }
 0x102   :  { %2418 = vmatpush.bf16.msrb.mxu0 %v3482_v24  ;;  %v3890_v24 = vor.u32 %v4490_v17, %v3889_v16  ;;  %v4203_v16 = vld [vmem:[#allocation7 + $0x8c0] sm:$0xf0] }
 0x103   :  { %2440 = vmatpush.bf16.msrb.mxu2 %v4010_v20  ;;  %2432 = vmatpush.bf16.msrb.mxu1 %v3674_v27  ;;  %v4538_v20 = vld [vmem:[#allocation7 + $0x7cc] sm:$0xf0]  ;;  %v3865_v27 = vld [vmem:[#allocation7 + $0x608] sm:$0xf] }
 0x104   :  { %2454 = vmatpush.bf16.msrb.mxu3 %v4202_v23  ;;  %v3147_v23 = vld [vmem:[#allocation7 + $0x80] sm:$0xf0] }
 0x105   :  { %2419 = vmatmul.bf16.vlgmr.msrb.gmra.mxu0 %v4777_v1  ;;  %v3150_v33 = vor.u32 %v4301_v22, %v3147_v23  ;;  %v3771_v22 = vld [vmem:[#allocation7 + $0x560] sm:$0xf0] }
 0x106   :  { %2467 = vmatpush.bf16.msra.mxu0 %v3270_v29  ;;  %2433 = vmatmul.bf16.vlgmr.msrb.gmra.mxu1 %v4779_v7  ;;  %v4082_v29 = vor.u32 %v4538_v20, %v4081_v19  ;;  %v3579_v19 = vld [vmem:[#allocation7 + $0x3e0] sm:$0xf0] }
 0x107   :  { %2481 = vmatpush.bf16.msra.mxu1 %v3462_v32  ;;  %2441 = vmatpush.bf16.msrb.mxu2 %v3986_v36  ;;  %v4532_v32 = vld [vmem:[#allocation7 + $0x79c] sm:$0xf0]  ;;  %v3651_v36 = vld [vmem:[#allocation7 + $0x470] sm:$0xf0] }
 0x108   :  { %2455 = vmatpush.bf16.msrb.mxu3 %v4178_v41  ;;  %v3843_v41 = vld [vmem:[#allocation7 + $0x5f0] sm:$0xf0]  ;;  %v3654_v48 = vor.u32 %v4427_v35, %v3651_v36  ;;  %v4451_v35 = vld [vmem:[#allocation7 + $0x51c] sm:$0xf] }
 0x109   :  { %v3747_v36 = vld [vmem:[#allocation7 + $0x530] sm:$0xf0] }
 0x10a   :  { %2468 = vmatpush.bf16.msra.mxu0 %v3246_v44  ;;  %v3866_v44 = vor.u32 %v4484_v30, %v3865_v27  ;;  %v4559_v27 = vld [vmem:[#allocation7 + $0x87c] sm:$0xf]  ;;  %v3750_v45 = vor.u32 %v4451_v35, %v3747_v36  ;;  %v3867_v35 = vld [vmem:[#allocation7 + $0x620] sm:$0xf0]  ;;  %v4529_v36 = vld [vmem:[#allocation7 + $0x78c] sm:$0xf] }
 0x10b   :  { %2482 = vmatpush.bf16.msra.mxu1 %v3438_v47  ;;  %2442 = vmatpush.bf16.msrb.mxu2 %v3962_v50  ;;  %v4058_v47 = vor.u32 %v4532_v32, %v4057_v31  ;;  %v3846_v50 = vor.u32 %v4475_v39, %v3843_v41  ;;  %v4403_v31 = vld [vmem:[#allocation7 + $0x39c] sm:$0xf]  ;;  %v3555_v32 = vld [vmem:[#allocation7 + $0x3b0] sm:$0xf0]  ;;  %v3963_v41 = vld [vmem:[#allocation7 + $0x6e0] sm:$0xf0] }
 0x10c   :  { %2456 = vmatpush.bf16.msrb.mxu3 %v4154_v53  ;;  %v4469_v53 = vld [vmem:[#allocation7 + $0x5ac] sm:$0xf]  ;;  %v3558_v38 = vor.u32 %v4403_v31, %v3555_v32  ;;  %v4377_v31 = vld [vmem:[#allocation7 + $0x2c4] sm:$0xf0] }
 0x10e   :  { %2469 = vmatpush.bf16.msra.mxu0 %v3222_v56  ;;  %v4289_v56 = vld [vmem:[#allocation7 + $0xc] sm:$0xf] }
 0x10f   :  { %2483 = vmatpush.bf16.msra.mxu1 %v3414_v59  ;;  %2443 = vmatpush.bf16.msrb.mxu2 %v3938_v62  ;;  %v3291_v59 = vld [vmem:[#allocation7 + $0x1a0] sm:$0xf0]  ;;  %v3630_v62 = vor.u32 %v4421_v49, %v3627_v52  ;;  %v3102_v3 = vor.u32 %v4289_v56, %v3099_v57  ;;  %v4445_v49 = vld [vmem:[#allocation7 + $0x4ec] sm:$0xf]  ;;  %v4499_v52 = vld [vmem:[#allocation7 + $0x69c] sm:$0xf] }
 0x110   :  { %2457 = vmatpush.bf16.msrb.mxu3 %v4130_v2  ;;  %v3822_v2 = vor.u32 %v4469_v53, %v3819_v54  ;;  %v3294_v6 = vor.u32 %v4337_v58, %v3291_v59  ;;  %v3939_v53 = vld [vmem:[#allocation7 + $0x6b0] sm:$0xf0]  ;;  %v4391_v58 = vld [vmem:[#allocation7 + $0x33c] sm:$0xf] }
 0x111   :  { %v4131_v56 = vld [vmem:[#allocation7 + $0x830] sm:$0xf0]  ;;  %v3942_v60 = vor.u32 %v4499_v52, %v3939_v53  ;;  %v4371_v52 = vld [vmem:[#allocation7 + $0x294] sm:$0xf0] }
 0x112   :  { %2470 = vmatpush.bf16.msra.mxu0 %v3198_v5  ;;  %v3603_v5 = vld [vmem:[#allocation7 + $0x410] sm:$0xf0] }
 0x113   :  { %2484 = vmatpush.bf16.msra.mxu1 %v3390_v9  ;;  %2444 = vmatpush.bf16.msrb.mxu2 %v3914_v12  ;;  %v4463_v9 = vld [vmem:[#allocation7 + $0x57c] sm:$0xf]  ;;  %v4517_v12 = vld [vmem:[#allocation7 + $0x72c] sm:$0xf]  ;;  %v3606_v14 = vor.u32 %v4415_v4, %v3603_v5  ;;  %v3507_v59 = vld [vmem:[#allocation7 + $0x350] sm:$0xf0] }
 0x114   :  { %2458 = vmatpush.bf16.msrb.mxu3 %v4106_v15  ;;  %v4565_v15 = vld [vmem:[#allocation7 + $0x8ac] sm:$0xf]  ;;  %v3798_v17 = vor.u32 %v4463_v9, %v3795_v10  ;;  %v4014_v20 = vor.u32 %v4517_v12, %v4011_v13  ;;  %v4107_v5 = vld [vmem:[#allocation7 + $0x800] sm:$0xf0]  ;;  %v3273_v13 = vld [vmem:[#allocation7 + $0x160] sm:$0xf] }
 0x115   :  { %v4206_v23 = vor.u32 %v4565_v15, %v4203_v16  ;;  %v4541_v4 = vld [vmem:[#allocation7 + $0x7ec] sm:$0xf]  ;;  %v3483_v9 = vld [vmem:[#allocation7 + $0x320] sm:$0xf0]  ;;  %v3465_v15 = vld [vmem:[#allocation7 + $0x2e0] sm:$0xf] }
 0x116   :  { %2471 = vmatpush.bf16.msra.mxu0 %v3174_v18  ;;  %v4409_v18 = vld [vmem:[#allocation7 + $0x3cc] sm:$0xf]  ;;  %v4110_v16 = vor.u32 %v4541_v4, %v4107_v5  ;;  %v4419_v4 = vld [vmem:[#allocation7 + $0x414] sm:$0xf0] }
 0x117   :  { %2485 = vmatpush.bf16.msra.mxu1 %v3366_v21  ;;  %2445 = vmatpush.bf16.msrb.mxu2 %v3890_v24  ;;  %v4457_v21 = vld [vmem:[#allocation7 + $0x54c] sm:$0xf]  ;;  %v4511_v24 = vld [vmem:[#allocation7 + $0x6fc] sm:$0xf]  ;;  %v3582_v26 = vor.u32 %v4409_v18, %v3579_v19  ;;  %v3891_v19 = vld [vmem:[#allocation7 + $0x650] sm:$0xf0] }
 0x118   :  { %2459 = vmatpush.bf16.msrb.mxu3 %v4082_v29  ;;  %v4179_v29 = vld [vmem:[#allocation7 + $0x890] sm:$0xf0]  ;;  %v3774_v30 = vor.u32 %v4457_v21, %v3771_v22  ;;  %v4433_v10 = vld [vmem:[#allocation7 + $0x48c] sm:$0xf]  ;;  %v4487_v18 = vld [vmem:[#allocation7 + $0x63c] sm:$0xf] }
 0x119   :  { %v4182_v39 = vor.u32 %v4559_v27, %v4179_v29  ;;  %v4535_v21 = vld [vmem:[#allocation7 + $0x7bc] sm:$0xf]  ;;  %v4083_v22 = vld [vmem:[#allocation7 + $0x7d0] sm:$0xf0]  ;;  %v3894_v27 = vor.u32 %v4487_v18, %v3891_v19  ;;  %v4329_v29 = vld [vmem:[#allocation7 + $0x144] sm:$0xf0] }
 0x11a   :  { %2472 = vmatpush.bf16.msra.mxu0 %v3150_v33  ;;  %v3990_v33 = vor.u32 %v4511_v24, %v3987_v25  ;;  %v3249_v25 = vld [vmem:[#allocation7 + $0x130] sm:$0xf]  ;;  %v4086_v32 = vor.u32 %v4535_v21, %v4083_v22 }
 0x11b   :  { %2486 = vmatpush.bf16.msra.mxu1 %v3342_v40  ;;  %2446 = vmatpush.bf16.msrb.mxu2 %v3866_v44  ;;  %v4505_v40 = vld [vmem:[#allocation7 + $0x6cc] sm:$0xf]  ;;  %v4155_v44 = vld [vmem:[#allocation7 + $0x860] sm:$0xf0]  ;;  %v3777_v19 = vld [vmem:[#allocation7 + $0x550] sm:$0xf] }
 0x11c   :  { %2460 = vmatpush.bf16.msrb.mxu3 %v4058_v47  ;;  %v3531_v47 = vld [vmem:[#allocation7 + $0x380] sm:$0xf0]  ;;  %v3153_v22 = vld [vmem:[#allocation7 + $0x70] sm:$0xf] }
 0x11d   :  { %v3534_v54 = vor.u32 %v4397_v46, %v3531_v47  ;;  %v3225_v47 = vld [vmem:[#allocation7 + $0x100] sm:$0xf] }
 0x11e   :  { %2473 = vmatpush.bf16.msra.mxu0 %v3126_v51  ;;  %2447 = vmatmul.bf16.vlgmr.msrb.gmra.mxu2 %v4793_v28  ;;  %v4158_v51 = vor.u32 %v4553_v42, %v4155_v44  ;;  %v3849_v42 = vld [vmem:[#allocation7 + $0x5e0] sm:$0xf]  ;;  %v4479_v44 = vld [vmem:[#allocation7 + $0x5f4] sm:$0xf0] }
 0x11f   :  { %2495 = vmatpush.bf16.msra.mxu2 %v3654_v48  ;;  %2487 = vmatpush.bf16.msra.mxu1 %v3318_v55  ;;  %v3966_v48 = vor.u32 %v4505_v40, %v3963_v41  ;;  %v4547_v55 = vld [vmem:[#allocation7 + $0x81c] sm:$0xf]  ;;  %v3657_v40 = vld [vmem:[#allocation7 + $0x460] sm:$0xf]  ;;  %v4431_v41 = vld [vmem:[#allocation7 + $0x474] sm:$0xf0]  ;;  %v3850_v53 = vor.u32 %v4479_v44, %v3849_v42 }
 0x120   :  { %2509 = vmatpush.bf16.msra.mxu3 %v3846_v50  ;;  %v3723_v50 = vld [vmem:[#allocation7 + $0x500] sm:$0xf0]  ;;  %v4134_v63 = vor.u32 %v4547_v55, %v4131_v56  ;;  %v4425_v55 = vld [vmem:[#allocation7 + $0x444] sm:$0xf0]  ;;  %v3537_v44 = vld [vmem:[#allocation7 + $0x370] sm:$0xf] }
 0x121   :  { %2461 = vmatmul.bf16.vlgmr.msrb.gmra.mxu3 %v4795_v34  ;;  %v3726_v57 = vor.u32 %v4445_v49, %v3723_v50  ;;  %v3658_v50 = vor.u32 %v4431_v41, %v3657_v40  ;;  %v3321_v41 = vld [vmem:[#allocation7 + $0x1c0] sm:$0xf] }
 0x122   :  { %2474 = vmatpush.bf16.msra.mxu0 %v3102_v3  ;;  %v3510_v3 = vor.u32 %v4391_v58, %v3507_v59  ;;  %v4473_v58 = vld [vmem:[#allocation7 + $0x5c4] sm:$0xf0] }
 0x123   :  { %2496 = vmatpush.bf16.msra.mxu2 %v3630_v62  ;;  %2488 = vmatpush.bf16.msra.mxu1 %v3294_v6  ;;  %v3699_v62 = vld [vmem:[#allocation7 + $0x4d0] sm:$0xf0]  ;;  %v4385_v6 = vld [vmem:[#allocation7 + $0x30c] sm:$0xf] }
 0x124   :  { %2510 = vmatpush.bf16.msra.mxu3 %v3822_v2  ;;  %v3915_v2 = vld [vmem:[#allocation7 + $0x680] sm:$0xf0] }
 0x125   :  { %2475 = vmatmul.bf16.vlgmr.msra.gmra.mxu0 %v4770_v37  ;;  %v3918_v12 = vor.u32 %v4493_v0, %v3915_v2  ;;  %v4365_v0 = vld [vmem:[#allocation7 + $0x264] sm:$0xf0] }
 0x126   :  { %2523 = vmatpush.bf16.msrb.mxu0 %v4038_v8  ;;  %2489 = vmatmul.bf16.vlgmr.msra.gmra.mxu1 %v4772_v43  ;;  %v3702_v8 = vor.u32 %v4439_v61, %v3699_v62  ;;  %v4317_v61 = vld [vmem:[#allocation7 + $0xe4] sm:$0xf0] }
 0x127   :  { %2537 = vmatpush.bf16.msrb.mxu1 %v4230_v11  ;;  %2497 = vmatpush.bf16.msra.mxu2 %v3606_v14  ;;  %v3675_v11 = vld [vmem:[#allocation7 + $0x4a0] sm:$0xf0]  ;;  %v4335_v14 = vld [vmem:[#allocation7 + $0x174] sm:$0xf0] }
 0x128   :  { %2511 = vmatpush.bf16.msra.mxu3 %v3798_v17  ;;  %v4383_v17 = vld [vmem:[#allocation7 + $0x2f4] sm:$0xf0]  ;;  %v3274_v24 = vor.u32 %v4335_v14, %v3273_v13  ;;  %v3369_v13 = vld [vmem:[#allocation7 + $0x220] sm:$0xf] }
 0x129   :  { %v4359_v14 = vld [vmem:[#allocation7 + $0x234] sm:$0xf0] }
 0x12a   :  { %2524 = vmatpush.bf16.msrb.mxu0 %v4014_v20  ;;  %v3486_v20 = vor.u32 %v4385_v6, %v3483_v9  ;;  %v3801_v6 = vld [vmem:[#allocation7 + $0x580] sm:$0xf]  ;;  %v3370_v21 = vor.u32 %v4359_v14, %v3369_v13  ;;  %v4209_v13 = vld [vmem:[#allocation7 + $0x8b0] sm:$0xf]  ;;  %v4569_v14 = vld [vmem:[#allocation7 + $0x8c4] sm:$0xf0] }
 0x12b   :  { %2538 = vmatpush.bf16.msrb.mxu1 %v4206_v23  ;;  %2498 = vmatpush.bf16.msra.mxu2 %v3582_v26  ;;  %v3678_v23 = vor.u32 %v4433_v10, %v3675_v11  ;;  %v3466_v26 = vor.u32 %v4383_v17, %v3465_v15  ;;  %v3177_v10 = vld [vmem:[#allocation7 + $0xa0] sm:$0xf]  ;;  %v4311_v11 = vld [vmem:[#allocation7 + $0xb4] sm:$0xf0]  ;;  %v4413_v17 = vld [vmem:[#allocation7 + $0x3e4] sm:$0xf0] }
 0x12c   :  { %2512 = vmatpush.bf16.msra.mxu3 %v3774_v30  ;;  %v3441_v30 = vld [vmem:[#allocation7 + $0x2b0] sm:$0xf]  ;;  %v3178_v18 = vor.u32 %v4311_v11, %v3177_v10 }
 0x12e   :  { %2525 = vmatpush.bf16.msrb.mxu0 %v3990_v33  ;;  %v4481_v33 = vld [vmem:[#allocation7 + $0x60c] sm:$0xf] }
 0x12f   :  { %2539 = vmatpush.bf16.msrb.mxu1 %v4182_v39  ;;  %2499 = vmatpush.bf16.msra.mxu2 %v3558_v38  ;;  %v4059_v39 = vld [vmem:[#allocation7 + $0x7a0] sm:$0xf0]  ;;  %v3250_v38 = vor.u32 %v4329_v29, %v3249_v25  ;;  %v3870_v46 = vor.u32 %v4481_v33, %v3867_v35  ;;  %v3345_v25 = vld [vmem:[#allocation7 + $0x1f0] sm:$0xf]  ;;  %v3561_v29 = vld [vmem:[#allocation7 + $0x3a0] sm:$0xf] }
 0x130   :  { %2513 = vmatpush.bf16.msra.mxu3 %v3750_v45  ;;  %v3442_v45 = vor.u32 %v4377_v31, %v3441_v30  ;;  %v4062_v49 = vor.u32 %v4529_v36, %v4059_v39  ;;  %v4407_v30 = vld [vmem:[#allocation7 + $0x3b4] sm:$0xf0]  ;;  %v3129_v36 = vld [vmem:[#allocation7 + $0x40] sm:$0xf] }
 0x131   :  { %v4455_v33 = vld [vmem:[#allocation7 + $0x534] sm:$0xf0]  ;;  %v3562_v40 = vor.u32 %v4407_v30, %v3561_v29 }
 0x132   :  { %2526 = vmatpush.bf16.msrb.mxu0 %v3966_v48  ;;  %v4323_v48 = vld [vmem:[#allocation7 + $0x114] sm:$0xf0] }
 0x133   :  { %2540 = vmatpush.bf16.msrb.mxu1 %v4158_v51  ;;  %2500 = vmatpush.bf16.msra.mxu2 %v3534_v54  ;;  %v3417_v51 = vld [vmem:[#allocation7 + $0x280] sm:$0xf]  ;;  %v3633_v54 = vld [vmem:[#allocation7 + $0x430] sm:$0xf]  ;;  %v3226_v56 = vor.u32 %v4323_v48, %v3225_v47  ;;  %v4299_v39 = vld [vmem:[#allocation7 + $0x54] sm:$0xf0] }
 0x134   :  { %2514 = vmatpush.bf16.msra.mxu3 %v3726_v57  ;;  %v3825_v57 = vld [vmem:[#allocation7 + $0x5b0] sm:$0xf]  ;;  %v3418_v59 = vor.u32 %v4371_v52, %v3417_v51  ;;  %v3634_v62 = vor.u32 %v4425_v55, %v3633_v54  ;;  %v4449_v48 = vld [vmem:[#allocation7 + $0x504] sm:$0xf0]  ;;  %v4515_v29 = vld [vmem:[#allocation7 + $0x714] sm:$0xf0] }
 0x135   :  { %v3826_v2 = vor.u32 %v4473_v58, %v3825_v57  ;;  %v3729_v47 = vld [vmem:[#allocation7 + $0x4f0] sm:$0xf]  ;;  %v4293_v51 = vld [vmem:[#allocation7 + $0x24] sm:$0xf0]  ;;  %v4527_v57 = vld [vmem:[#allocation7 + $0x774] sm:$0xf0] }
 0x136   :  { %2527 = vmatpush.bf16.msrb.mxu0 %v3942_v60  ;;  %v3201_v60 = vld [vmem:[#allocation7 + $0xd0] sm:$0xf]  ;;  %v4233_v58 = vld [vmem:[#allocation7 + $0x8e0] sm:$0xf] }
 0x137   :  { %2541 = vmatpush.bf16.msrb.mxu1 %v4134_v63  ;;  %2501 = vmatpush.bf16.msra.mxu2 %v3510_v3  ;;  %v3393_v63 = vld [vmem:[#allocation7 + $0x250] sm:$0xf]  ;;  %v3609_v3 = vld [vmem:[#allocation7 + $0x400] sm:$0xf]  ;;  %v3202_v5 = vor.u32 %v4317_v61, %v3201_v60  ;;  %v4575_v60 = vld [vmem:[#allocation7 + $0x8f4] sm:$0xf0] }
 0x138   :  { %2515 = vmatpush.bf16.msra.mxu3 %v3702_v8  ;;  %v4467_v8 = vld [vmem:[#allocation7 + $0x594] sm:$0xf0]  ;;  %v3394_v9 = vor.u32 %v4365_v0, %v3393_v63  ;;  %v3297_v52 = vld [vmem:[#allocation7 + $0x190] sm:$0xf]  ;;  %v3513_v61 = vld [vmem:[#allocation7 + $0x340] sm:$0xf]  ;;  %v4234_v10 = vor.u32 %v4575_v60, %v4233_v58 }
 0x139   :  { %v3802_v15 = vor.u32 %v4467_v8, %v3801_v6  ;;  %v4017_v8 = vld [vmem:[#allocation7 + $0x730] sm:$0xf]  ;;  %v4368_v58 = vld [vmem:[#allocation7 + $0x284] sm:$0xf] }
 0x13a   :  { %2528 = vmatpush.bf16.msrb.mxu0 %v3918_v12  ;;  %v3610_v12 = vor.u32 %v4419_v4, %v3609_v3  ;;  %v4443_v3 = vld [vmem:[#allocation7 + $0x4d4] sm:$0xf0] }
 0x13b   :  { %2542 = vmatpush.bf16.msrb.mxu1 %v4110_v16  ;;  %2502 = vmatpush.bf16.msra.mxu2 %v3486_v20  ;;  %v3585_v16 = vld [vmem:[#allocation7 + $0x3d0] sm:$0xf]  ;;  %v4461_v20 = vld [vmem:[#allocation7 + $0x564] sm:$0xf0] }
 0x13c   :  { %2516 = vmatpush.bf16.msra.mxu3 %v3678_v23  ;;  %v4305_v23 = vld [vmem:[#allocation7 + $0x84] sm:$0xf0] }
 0x13d   :  { %v3154_v31 = vor.u32 %v4305_v23, %v3153_v22  ;;  %v4380_v23 = vld [vmem:[#allocation7 + $0x2e4] sm:$0xf] }
 0x13e   :  { %2529 = vmatpush.bf16.msrb.mxu0 %v3894_v27  ;;  %2503 = vmatmul.bf16.vlgmr.msra.gmra.mxu2 %v4777_v1  ;;  %v3778_v27 = vor.u32 %v4461_v20, %v3777_v19  ;;  %v4437_v19 = vld [vmem:[#allocation7 + $0x4a4] sm:$0xf0]  ;;  %v4332_v20 = vld [vmem:[#allocation7 + $0x164] sm:$0xf] }
 0x13f   :  { %2551 = vmatpush.bf16.msrb.mxu2 %v3274_v24  ;;  %2543 = vmatpush.bf16.msrb.mxu1 %v4086_v32  ;;  %v3586_v24 = vor.u32 %v4413_v17, %v3585_v16  ;;  %v3753_v32 = vld [vmem:[#allocation7 + $0x520] sm:$0xf]  ;;  %v3489_v16 = vld [vmem:[#allocation7 + $0x310] sm:$0xf]  ;;  %v4389_v17 = vld [vmem:[#allocation7 + $0x324] sm:$0xf0] }
 0x140   :  { %2565 = vmatpush.bf16.msrb.mxu3 %v3466_v26  ;;  %v4353_v26 = vld [vmem:[#allocation7 + $0x204] sm:$0xf0]  ;;  %v3754_v42 = vor.u32 %v4455_v33, %v3753_v32  ;;  %v4819_v4 = vpop.f32.mrf.mxu2  ;;  %v4185_v32 = vld [vmem:[#allocation7 + $0x880] sm:$0xf]  ;;  %v4563_v33 = vld [vmem:[#allocation7 + $0x894] sm:$0xf0] }
 0x141   :  { %2517 = vmatmul.bf16.vlgmr.msra.gmra.mxu3 %v4779_v7  ;;  %v3346_v35 = vor.u32 %v4353_v26, %v3345_v25  ;;  %v4210_v25 = vor.u32 %v4569_v14, %v4209_v13  ;;  %v3490_v26 = vor.u32 %v4389_v17, %v3489_v16  ;;  %v3395_v13 = vld [vmem:[#allocation7 + $0x268] sm:$0xf0]  ;;  %v3921_v16 = vld [vmem:[#allocation7 + $0x670] sm:$0xf]  ;;  %v4497_v17 = vld [vmem:[#allocation7 + $0x684] sm:$0xf0] }
 0x142   :  { %2530 = vmatpush.bf16.msrb.mxu0 %v3870_v46  ;;  %v3130_v46 = vor.u32 %v4299_v39, %v3129_v36  ;;  %v4815_v54 = vpop.f32.mrf.mxu0  ;;  %v4326_v39 = vld [vmem:[#allocation7 + $0x134] sm:$0xf] }
 0x143   :  { %2552 = vmatpush.bf16.msrb.mxu2 %v3250_v38  ;;  %2544 = vmatpush.bf16.msrb.mxu1 %v4062_v49  ;;  %v4347_v38 = vld [vmem:[#allocation7 + $0x1d4] sm:$0xf0]  ;;  %v3105_v49 = vld [vmem:[#allocation7 + $0x10] sm:$0xf]  ;;  %v4817_v63 = vpop.f32.mrf.mxu1 }
 0x144   :  { %2566 = vmatpush.bf16.msrb.mxu3 %v3442_v45  ;;  %v4401_v45 = vld [vmem:[#allocation7 + $0x384] sm:$0xf0]  ;;  %v3106_v0 = vor.u32 %v4293_v51, %v3105_v49 }
 0x145   :  { %2531 = vmatmul.bf16.vlgmr.msrb.gmra.mxu0 %v4793_v28  ;;  %v3538_v55 = vor.u32 %v4401_v45, %v3537_v44  ;;  %v4186_v45 = vor.u32 %v4563_v33, %v4185_v32  ;;  %v4557_v51 = vld [vmem:[#allocation7 + $0x864] sm:$0xf0]  ;;  %v3897_v33 = vld [vmem:[#allocation7 + $0x640] sm:$0xf] }
 0x146   :  { %2579 = vmatpush.bf16.msra.mxu0 %v3658_v50  ;;  %2545 = vmatmul.bf16.vlgmr.msrb.gmra.mxu1 %v4795_v34  ;;  %v3322_v50 = vor.u32 %v4347_v38, %v3321_v41  ;;  %v4374_v38 = vld [vmem:[#allocation7 + $0x2b4] sm:$0xf] }
 0x147   :  { %2593 = vmatpush.bf16.msra.mxu1 %v3850_v53  ;;  %2553 = vmatpush.bf16.msrb.mxu2 %v3226_v56  ;;  %v4341_v53 = vld [vmem:[#allocation7 + $0x1a4] sm:$0xf0]  ;;  %v4041_v56 = vld [vmem:[#allocation7 + $0x760] sm:$0xf] }
 0x148   :  { %2567 = vmatpush.bf16.msrb.mxu3 %v3418_v59  ;;  %v3730_v59 = vor.u32 %v4449_v48, %v3729_v47  ;;  %v4042_v6 = vor.u32 %v4527_v57, %v4041_v56  ;;  %v4509_v47 = vld [vmem:[#allocation7 + $0x6e4] sm:$0xf0]  ;;  %v2226_v48 = vpop.f32.mrf.mxu2  ;;  %v3227_v56 = vld [vmem:[#allocation7 + $0x118] sm:$0xf0] }
 0x14a   :  { %2580 = vmatpush.bf16.msra.mxu0 %v3634_v62  ;;  %v4395_v62 = vld [vmem:[#allocation7 + $0x354] sm:$0xf0] }
 0x14b   :  { %2594 = vmatpush.bf16.msra.mxu1 %v3826_v2  ;;  %2554 = vmatpush.bf16.msrb.mxu2 %v3202_v5  ;;  %v3705_v2 = vld [vmem:[#allocation7 + $0x4c0] sm:$0xf]  ;;  %v3298_v5 = vor.u32 %v4341_v53, %v3297_v52  ;;  %v3514_v11 = vor.u32 %v4395_v62, %v3513_v61  ;;  %v4827_v44 = vpop.f32.mrf.mxu1 }
 0x14c   :  { %2568 = vmatpush.bf16.msrb.mxu3 %v3394_v9  ;;  %v4821_v9 = vpop.f32.mrf.mxu3  ;;  %v3945_v62 = vld [vmem:[#allocation7 + $0x6a0] sm:$0xf] }
 0x14d   :  { %v2239_v60 = vadd.f32 %v4821_v9, %v4819_v4 }
 0x14e   :  { %2581 = vmatpush.bf16.msra.mxu0 %v3610_v12  ;;  %v4521_v12 = vld [vmem:[#allocation7 + $0x744] sm:$0xf0] }
 0x14f   :  { %2595 = vmatpush.bf16.msra.mxu1 %v3802_v15  ;;  %2555 = vmatpush.bf16.msrb.mxu2 %v3178_v18  ;;  %v3706_v15 = vor.u32 %v4443_v3, %v3705_v2  ;;  %v3681_v18 = vld [vmem:[#allocation7 + $0x490] sm:$0xf]  ;;  %v4018_v22 = vor.u32 %v4521_v12, %v4017_v8  ;;  %v4137_v3 = vld [vmem:[#allocation7 + $0x820] sm:$0xf]  ;;  %v4314_v8 = vld [vmem:[#allocation7 + $0xd4] sm:$0xf]  ;;  %v2253_v4 = vadd.f32 %v4815_v54, %v2239_v60 }
 0x150   :  { %2569 = vmatpush.bf16.msrb.mxu3 %v3370_v21  ;;  %v3275_v21 = vld [vmem:[#allocation7 + $0x178] sm:$0xf0]  ;;  %v3682_v30 = vor.u32 %v4437_v19, %v3681_v18  ;;  %v4362_v12 = vld [vmem:[#allocation7 + $0x254] sm:$0xf]  ;;  %v3922_v54 = vor.u32 %v4497_v17, %v3921_v16 }
 0x152   :  { %2582 = vmatpush.bf16.msra.mxu0 %v3586_v24  ;;  %v3467_v24 = vld [vmem:[#allocation7 + $0x2f8] sm:$0xf0] }
 0x153   :  { %2596 = vmatpush.bf16.msra.mxu1 %v3778_v27  ;;  %2556 = vmatpush.bf16.msrb.mxu2 %v3154_v31  ;;  %v3993_v27 = vld [vmem:[#allocation7 + $0x700] sm:$0xf]  ;;  %v3278_v31 = vor.u32 %v4332_v20, %v3275_v21  ;;  %v3470_v36 = vor.u32 %v4380_v23, %v3467_v24  ;;  %v4113_v20 = vld [vmem:[#allocation7 + $0x7f0] sm:$0xf]  ;;  %v4545_v21 = vld [vmem:[#allocation7 + $0x804] sm:$0xf0]  ;;  %v3398_v24 = vor.u32 %v4362_v12, %v3395_v13 }
 0x154   :  { %2570 = vmatpush.bf16.msrb.mxu3 %v3346_v35  ;;  %v4824_v35 = vpop.f32.mrf.mxu0  ;;  %v3994_v41 = vor.u32 %v4515_v29, %v3993_v27  ;;  %v2240_v52 = vpop.f32.mrf.mxu3  ;;  %v4356_v27 = vld [vmem:[#allocation7 + $0x224] sm:$0xf]  ;;  %v3371_v29 = vld [vmem:[#allocation7 + $0x238] sm:$0xf0]  ;;  %v4114_v32 = vor.u32 %v4545_v21, %v4113_v20  ;;  %v4290_v20 = vld [vmem:[#allocation7 + $0x14] sm:$0xf] }
 0x155   :  { %v2241_v9 = vadd.f32 %v2240_v52, %v2226_v48  ;;  %v4350_v48 = vld [vmem:[#allocation7 + $0x1f4] sm:$0xf]  ;;  %v4065_v52 = vld [vmem:[#allocation7 + $0x790] sm:$0xf] }
 0x156   :  { %2583 = vmatpush.bf16.msra.mxu0 %v3562_v40  ;;  %v3251_v40 = vld [vmem:[#allocation7 + $0x148] sm:$0xf0] }
 0x157   :  { %2597 = vmatpush.bf16.msra.mxu1 %v3754_v42  ;;  %2557 = vmatpush.bf16.msrb.mxu2 %v3130_v46  ;;  %v3443_v42 = vld [vmem:[#allocation7 + $0x2c8] sm:$0xf0]  ;;  %v3969_v46 = vld [vmem:[#allocation7 + $0x6d0] sm:$0xf]  ;;  %v3254_v49 = vor.u32 %v4326_v39, %v3251_v40  ;;  %v4089_v40 = vld [vmem:[#allocation7 + $0x7c0] sm:$0xf] }
 0x158   :  { %2571 = vmatpush.bf16.msrb.mxu3 %v3322_v50  ;;  %v4161_v50 = vld [vmem:[#allocation7 + $0x850] sm:$0xf]  ;;  %v3446_v53 = vor.u32 %v4374_v38, %v3443_v42  ;;  %v3970_v57 = vor.u32 %v4509_v47, %v3969_v46  ;;  %v3374_v42 = vor.u32 %v4356_v27, %v3371_v29  ;;  %v3155_v46 = vld [vmem:[#allocation7 + $0x88] sm:$0xf0]  ;;  %v4524_v29 = vld [vmem:[#allocation7 + $0x764] sm:$0xf] }
 0x159   :  { %v4162_v61 = vor.u32 %v4557_v51, %v4161_v50  ;;  %v4485_v51 = vld [vmem:[#allocation7 + $0x624] sm:$0xf0]  ;;  %v3299_v27 = vld [vmem:[#allocation7 + $0x1a8] sm:$0xf0] }
 0x15a   :  { %2584 = vmatpush.bf16.msra.mxu0 %v3538_v55  ;;  %v4320_v55 = vld [vmem:[#allocation7 + $0x104] sm:$0xf] }
 0x15b   :  { %2598 = vmatpush.bf16.msra.mxu1 %v3730_v59  ;;  %2558 = vmatpush.bf16.msrb.mxu2 %v3106_v0  ;;  %v3419_v59 = vld [vmem:[#allocation7 + $0x298] sm:$0xf0]  ;;  %v4503_v0 = vld [vmem:[#allocation7 + $0x6b4] sm:$0xf0]  ;;  %v3230_v2 = vor.u32 %v4320_v55, %v3227_v56 }
 0x15c   :  { %2572 = vmatpush.bf16.msrb.mxu3 %v3298_v5  ;;  %v4551_v5 = vld [vmem:[#allocation7 + $0x834] sm:$0xf0]  ;;  %v4834_v14 = vpop.f32.mrf.mxu0 }
 0x15e   :  { %2585 = vmatpush.bf16.msra.mxu0 %v3514_v11  ;;  %2559 = vmatmul.bf16.vlgmr.msrb.gmra.mxu2 %v4770_v37  ;;  %v3946_v11 = vor.u32 %v4503_v0, %v3945_v62 }
 0x15f   :  { %2607 = vmatpush.bf16.msra.mxu2 %v4042_v6  ;;  %2599 = vmatpush.bf16.msra.mxu1 %v3706_v15  ;;  %v3422_v6 = vor.u32 %v4368_v58, %v3419_v59  ;;  %v4138_v15 = vor.u32 %v4551_v5, %v4137_v3  ;;  %v3659_v58 = vld [vmem:[#allocation7 + $0x478] sm:$0xf0]  ;;  %v4476_v59 = vld [vmem:[#allocation7 + $0x5e4] sm:$0xf] }
 0x160   :  { %2621 = vmatpush.bf16.msra.mxu3 %v4234_v10  ;;  %v3203_v10 = vld [vmem:[#allocation7 + $0xe8] sm:$0xf0]  ;;  %v2280_v18 = vpop.f32.mrf.mxu2  ;;  %v4296_v3 = vld [vmem:[#allocation7 + $0x44] sm:$0xf]  ;;  %v3131_v5 = vld [vmem:[#allocation7 + $0x58] sm:$0xf0] }
 0x161   :  { %2573 = vmatmul.bf16.vlgmr.msrb.gmra.mxu3 %v4772_v43  ;;  %v3206_v19 = vor.u32 %v4314_v8, %v3203_v10  ;;  %v2294_v23 = vpop.f32.mrf.mxu3  ;;  %v4344_v8 = vld [vmem:[#allocation7 + $0x1c4] sm:$0xf]  ;;  %v3323_v10 = vld [vmem:[#allocation7 + $0x1d8] sm:$0xf0]  ;;  %v3134_v17 = vor.u32 %v4296_v3, %v3131_v5  ;;  %v3587_v3 = vld [vmem:[#allocation7 + $0x3e8] sm:$0xf0] }
 0x162   :  { %2586 = vmatpush.bf16.msra.mxu0 %v3490_v26  ;;  %v3179_v26 = vld [vmem:[#allocation7 + $0xb8] sm:$0xf0] }
 0x163   :  { %2608 = vmatpush.bf16.msra.mxu2 %v4018_v22  ;;  %2600 = vmatpush.bf16.msra.mxu1 %v3682_v30  ;;  %v4836_v22 = vpop.f32.mrf.mxu1  ;;  %v2267_v30 = vadd.f32 %v4817_v63, %v2253_v4  ;;  %v3873_v63 = vld [vmem:[#allocation7 + $0x610] sm:$0xf] }
 0x164   :  { %2622 = vmatpush.bf16.msra.mxu3 %v4210_v25  ;;  %v4308_v25 = vld [vmem:[#allocation7 + $0xa4] sm:$0xf]  ;;  %v4841_v60 = vpop.f32.mrf.mxu0 }
 0x165   :  { %2587 = vmatmul.bf16.vlgmr.msra.gmra.mxu0 %v4777_v1  ;;  %v3182_v39 = vor.u32 %v4308_v25, %v3179_v26  ;;  %v2281_v38 = vadd.f32 %v2280_v18, %v2267_v30  ;;  %v4470_v18 = vld [vmem:[#allocation7 + $0x5b4] sm:$0xf]  ;;  %v3326_v25 = vor.u32 %v4344_v8, %v3323_v10  ;;  %v3107_v26 = vld [vmem:[#allocation7 + $0x28] sm:$0xf0]  ;;  %v4043_v30 = vld [vmem:[#allocation7 + $0x778] sm:$0xf0] }
 0x166   :  { %2635 = vmatpush.bf16.msrb.mxu0 %v3278_v31  ;;  %2601 = vmatmul.bf16.vlgmr.msra.gmra.mxu1 %v4779_v7  ;;  %v2255_v31 = vadd.f32 %v4824_v35, %v2241_v9  ;;  %v4422_v9 = vld [vmem:[#allocation7 + $0x434] sm:$0xf] }
 0x167   :  { %2649 = vmatpush.bf16.msrb.mxu1 %v3470_v36  ;;  %2609 = vmatpush.bf16.msra.mxu2 %v3994_v41  ;;  %v4491_v36 = vld [vmem:[#allocation7 + $0x654] sm:$0xf0] }
 0x168   :  { %2623 = vmatpush.bf16.msra.mxu3 %v4186_v45  ;;  %v4539_v41 = vld [vmem:[#allocation7 + $0x7d4] sm:$0xf0]  ;;  %v4302_v45 = vld [vmem:[#allocation7 + $0x74] sm:$0xf]  ;;  %v3898_v47 = vor.u32 %v4491_v36, %v3897_v33  ;;  %v2269_v35 = vadd.f32 %v4827_v44, %v2255_v31  ;;  %v2282_v55 = vpop.f32.mrf.mxu2  ;;  %v3851_v44 = vld [vmem:[#allocation7 + $0x5f8] sm:$0xf0]  ;;  %v2323_v31 = vadd.f32 %v4836_v22, %v4834_v14  ;;  %v4046_v22 = vor.u32 %v4524_v29, %v4043_v30 }
 0x169   :  { %v4090_v50 = vor.u32 %v4539_v41, %v4089_v40  ;;  %v3158_v56 = vor.u32 %v4302_v45, %v3155_v46  ;;  %v2296_v0 = vpop.f32.mrf.mxu3  ;;  %v3854_v16 = vor.u32 %v4476_v59, %v3851_v44  ;;  %v4235_v40 = vld [vmem:[#allocation7 + $0x8f8] sm:$0xf0]  ;;  %v4416_v46 = vld [vmem:[#allocation7 + $0x404] sm:$0xf]  ;;  %v4410_v44 = vld [vmem:[#allocation7 + $0x3d4] sm:$0xf] }
 0x16a   :  { %2636 = vmatpush.bf16.msrb.mxu0 %v3254_v49  ;;  %v3347_v49 = vld [vmem:[#allocation7 + $0x208] sm:$0xf0]  ;;  %v2283_v62 = vadd.f32 %v2282_v55, %v2269_v35  ;;  %v4464_v35 = vld [vmem:[#allocation7 + $0x584] sm:$0xf]  ;;  %v3563_v29 = vld [vmem:[#allocation7 + $0x3b8] sm:$0xf0] }
 0x16b   :  { %2650 = vmatpush.bf16.msrb.mxu1 %v3446_v53  ;;  %2610 = vmatpush.bf16.msra.mxu2 %v3970_v57  ;;  %v4533_v53 = vld [vmem:[#allocation7 + $0x7a4] sm:$0xf0]  ;;  %v4428_v57 = vld [vmem:[#allocation7 + $0x464] sm:$0xf] }
 0x16c   :  { %2624 = vmatpush.bf16.msra.mxu3 %v4162_v61  ;;  %v4843_v61 = vadd.f32 %v2294_v23, %v2281_v38  ;;  %v4847_v12 = vadd.f32 %v2296_v0, %v2283_v62  ;;  %v4066_v13 = vor.u32 %v4533_v53, %v4065_v52  ;;  %v3662_v4 = vor.u32 %v4428_v57, %v3659_v58  ;;  %v4518_v52 = vld [vmem:[#allocation7 + $0x734] sm:$0xf]  ;;  %v4019_v53 = vld [vmem:[#allocation7 + $0x748] sm:$0xf0]  ;;  %v2364_v55 = vpop.f32.mrf.mxu0 }
 0x16d   :  { %v4566_v62 = vld [vmem:[#allocation7 + $0x8b4] sm:$0xf]  ;;  %v4211_v0 = vld [vmem:[#allocation7 + $0x8c8] sm:$0xf0] }
 0x16e   :  { %2637 = vmatpush.bf16.msrb.mxu0 %v3230_v2  ;;  %v3350_v2 = vor.u32 %v4350_v48, %v3347_v49  ;;  %v2773_v21 = vmul.f32 %v4843_v61, %v4843_v61  ;;  %v2731_v23 = vadd.f32 %v4847_v12, %v4843_v61 }
 0x16f   :  { %2651 = vmatpush.bf16.msrb.mxu1 %v3422_v6  ;;  %2611 = vmatpush.bf16.msra.mxu2 %v3946_v11  ;;  %v3874_v6 = vor.u32 %v4485_v51, %v3873_v63  ;;  %v4845_v11 = vpop.f32.mrf.mxu1 }
 0x170   :  { %2625 = vmatpush.bf16.msra.mxu3 %v4138_v15  ;;  %v3635_v15 = vld [vmem:[#allocation7 + $0x448] sm:$0xf0]  ;;  %v2336_v41 = vpop.f32.mrf.mxu2 }
 0x171   :  { %v3638_v36 = vor.u32 %v4422_v9, %v3635_v15  ;;  %v2337_v63 = vadd.f32 %v2336_v41, %v2323_v31  ;;  %v2350_v14 = vpop.f32.mrf.mxu3  ;;  %v3779_v9 = vld [vmem:[#allocation7 + $0x568] sm:$0xf0]  ;;  %v4214_v15 = vor.u32 %v4566_v62, %v4211_v0  ;;  %v4392_v0 = vld [vmem:[#allocation7 + $0x344] sm:$0xf] }
 0x172   :  { %2638 = vmatpush.bf16.msrb.mxu0 %v3206_v19  ;;  %v3827_v19 = vld [vmem:[#allocation7 + $0x5c8] sm:$0xf0] }
 0x173   :  { %2652 = vmatpush.bf16.msrb.mxu1 %v3398_v24  ;;  %2612 = vmatpush.bf16.msra.mxu2 %v3922_v54  ;;  %v2779_v24 = vmul.f32 %v4847_v12, %v4847_v12  ;;  %v4338_v54 = vld [vmem:[#allocation7 + $0x194] sm:$0xf]  ;;  %v3830_v38 = vor.u32 %v4470_v18, %v3827_v19  ;;  %v2351_v58 = vadd.f32 %v2350_v14, %v2337_v63 }
 0x174   :  { %2626 = vmatpush.bf16.msra.mxu3 %v4114_v32  ;;  %v2732_v32 = vrot.slane %v2731_v23, 4  ;;  %v3302_v45 = vor.u32 %v4338_v54, %v3299_v27  ;;  %v4404_v27 = vld [vmem:[#allocation7 + $0x3a4] sm:$0xf]  ;;  %v4446_v14 = vld [vmem:[#allocation7 + $0x4f4] sm:$0xf] }
 0x175   :  { %v2785_v33 = vadd.f32 %v2779_v24, %v2773_v21  ;;  %v2365_v10 = vadd.f32 %v2364_v55, %v2351_v58  ;;  %v3590_v21 = vor.u32 %v4410_v44, %v3587_v3  ;;  %v4187_v24 = vld [vmem:[#allocation7 + $0x898] sm:$0xf0]  ;;  %v4548_v55 = vld [vmem:[#allocation7 + $0x824] sm:$0xf] }
 0x176   :  { %2639 = vmatpush.bf16.msrb.mxu0 %v3182_v39  ;;  %v4572_v39 = vld [vmem:[#allocation7 + $0x8e4] sm:$0xf]  ;;  %v2733_v48 = vadd.f32 %v2732_v32, %v2731_v23 }
 0x177   :  { %2653 = vmatpush.bf16.msrb.mxu1 %v3374_v42  ;;  %2613 = vmatpush.bf16.msra.mxu2 %v3898_v47  ;;  %v3110_v42 = vor.u32 %v4290_v20, %v3107_v26  ;;  %v3611_v47 = vld [vmem:[#allocation7 + $0x418] sm:$0xf0]  ;;  %v2786_v49 = vrot.slane %v2785_v33, 4  ;;  %v4238_v51 = vor.u32 %v4572_v39, %v4235_v40  ;;  %v2378_v5 = vpop.f32.mrf.mxu1  ;;  %v4560_v23 = vld [vmem:[#allocation7 + $0x884] sm:$0xf] }
 0x178   :  { %2627 = vmatpush.bf16.msra.mxu3 %v4090_v50  ;;  %v3803_v50 = vld [vmem:[#allocation7 + $0x598] sm:$0xf0]  ;;  %v3614_v59 = vor.u32 %v4416_v46, %v3611_v47  ;;  %v4859_v20 = vadd.f32 %v2378_v5, %v2365_v10  ;;  %v2338_v26 = vpop.f32.mrf.mxu2  ;;  %v4452_v32 = vld [vmem:[#allocation7 + $0x524] sm:$0xf]  ;;  %v4190_v39 = vor.u32 %v4560_v23, %v4187_v24  ;;  %v4506_v40 = vld [vmem:[#allocation7 + $0x6d4] sm:$0xf] }
 0x179   :  { %v2787_v57 = vadd.f32 %v2786_v49, %v2785_v33  ;;  %v3755_v33 = vld [vmem:[#allocation7 + $0x538] sm:$0xf0]  ;;  %v2352_v41 = vpop.f32.mrf.mxu3  ;;  %v4398_v47 = vld [vmem:[#allocation7 + $0x374] sm:$0xf]  ;;  %v2366_v49 = vpop.f32.mrf.mxu0  ;;  %v4440_v5 = vld [vmem:[#allocation7 + $0x4c4] sm:$0xf] }
 0x17a   :  { %2640 = vmatpush.bf16.msrb.mxu0 %v3158_v56  ;;  %v2734_v56 = vrot.slane %v2733_v48, 2  ;;  %v2719_v31 = vpack.c.bf16 %v4859_v20, %v4843_v61  ;;  %v3758_v61 = vor.u32 %v4452_v32, %v3755_v33  ;;  %v4386_v24 = vld [vmem:[#allocation7 + $0x314] sm:$0xf]  ;;  %v4536_v32 = vld [vmem:[#allocation7 + $0x7c4] sm:$0xf] }
 0x17b   :  { %2654 = vmatpush.bf16.msrb.mxu1 %v3350_v2  ;;  %2614 = vmatpush.bf16.msra.mxu2 %v3874_v6  ;;  %v3806_v2 = vor.u32 %v4464_v35, %v3803_v50  ;;  %v2788_v8 = vrot.slane %v2787_v57, 2  ;;  %v4500_v35 = vld [vmem:[#allocation7 + $0x6a4] sm:$0xf]  ;;  %v4091_v33 = vld [vmem:[#allocation7 + $0x7d8] sm:$0xf0] }
 0x17c   :  { %2628 = vmatpush.bf16.msra.mxu3 %v4066_v13  ;;  %v2735_v6 = vadd.f32 %v2734_v56, %v2733_v48  ;;  %v4022_v13 = vor.u32 %v4518_v52, %v4019_v53  ;;  %2725 = vst [vmem:[#allocation8] sm:$0xff] %v2719_v31  ;;  %v3539_v48 = vld [vmem:[#allocation7 + $0x388] sm:$0xf0]  ;;  %v3947_v53 = vld [vmem:[#allocation7 + $0x6b8] sm:$0xf0] }
 0x17d   :  { %v2789_v19 = vadd.f32 %v2788_v8, %v2787_v57  ;;  %v4139_v56 = vld [vmem:[#allocation7 + $0x838] sm:$0xf0]  ;;  %v3542_v58 = vor.u32 %v4398_v47, %v3539_v48  ;;  %v3950_v44 = vor.u32 %v4500_v35, %v3947_v53  ;;  %v2774_v8 = vmul.f32 %v4859_v20, %v4859_v20 }
 0x17e   :  { %2641 = vmatpush.bf16.msrb.mxu0 %v3134_v17  ;;  %2615 = vmatmul.bf16.vlgmr.msra.gmra.mxu2 %v4793_v28  ;;  %v3995_v17 = vld [vmem:[#allocation7 + $0x718] sm:$0xf0]  ;;  %v2736_v18 = vrot.slane %v2735_v6, 1  ;;  %v4142_v3 = vor.u32 %v4548_v55, %v4139_v56 }
 0x17f   :  { %2663 = vmatpush.bf16.msrb.mxu2 %v3662_v4  ;;  %2655 = vmatpush.bf16.msrb.mxu1 %v3326_v25  ;;  %v4458_v4 = vld [vmem:[#allocation7 + $0x554] sm:$0xf]  ;;  %v2325_v25 = vadd.f32 %v4845_v11, %v4841_v60  ;;  %v2790_v30 = vrot.slane %v2789_v19, 1  ;;  %v3971_v60 = vld [vmem:[#allocation7 + $0x6e8] sm:$0xf0]  ;;  %v2380_v57 = vpop.f32.mrf.mxu1 }
 0x180   :  { %2677 = vmatpush.bf16.msrb.mxu3 %v3854_v16  ;;  %v4512_v16 = vld [vmem:[#allocation7 + $0x704] sm:$0xf]  ;;  %v3782_v54 = vor.u32 %v4458_v4, %v3779_v9  ;;  %v3974_v63 = vor.u32 %v4506_v40, %v3971_v60  ;;  %v4494_v9 = vld [vmem:[#allocation7 + $0x674] sm:$0xf]  ;;  %v3899_v31 = vld [vmem:[#allocation7 + $0x658] sm:$0xf0] }
 0x181   :  { %2629 = vmatmul.bf16.vlgmr.msra.gmra.mxu3 %v4795_v34  ;;  %v2791_v11 = vadd.f32 %v2790_v30, %v2789_v19  ;;  %v4488_v30 = vld [vmem:[#allocation7 + $0x644] sm:$0xf]  ;;  %v2392_v35 = vpop.f32.mrf.mxu2 }
 0x182   :  { %2642 = vmatpush.bf16.msrb.mxu0 %v3110_v42  ;;  %v4554_v42 = vld [vmem:[#allocation7 + $0x854] sm:$0xf]  ;;  %v3902_v60 = vor.u32 %v4488_v30, %v3899_v31  ;;  %v2420_v55 = vpop.f32.mrf.mxu0 }
 0x183   :  { %2664 = vmatpush.bf16.msrb.mxu2 %v3638_v36  ;;  %2656 = vmatpush.bf16.msrb.mxu1 %v3302_v45  ;;  %v2339_v36 = vadd.f32 %v2338_v26, %v2325_v25  ;;  %v4163_v45 = vld [vmem:[#allocation7 + $0x868] sm:$0xf0] }
 0x184   :  { %2678 = vmatpush.bf16.msrb.mxu3 %v3830_v38  ;;  %v3566_v38 = vor.u32 %v4404_v27, %v3563_v29  ;;  %v4166_v52 = vor.u32 %v4554_v42, %v4163_v45  ;;  %v3491_v25 = vld [vmem:[#allocation7 + $0x328] sm:$0xf0]  ;;  %v4530_v45 = vld [vmem:[#allocation7 + $0x794] sm:$0xf] }
 0x185   :  { %2643 = vmatmul.bf16.vlgmr.msrb.gmra.mxu0 %v4770_v37  ;;  %v3998_v37 = vor.u32 %v4512_v16, %v3995_v17  ;;  %v2353_v46 = vadd.f32 %v2352_v41, %v2339_v36  ;;  %v4542_v17 = vld [vmem:[#allocation7 + $0x7f4] sm:$0xf]  ;;  %v4094_v41 = vor.u32 %v4536_v32, %v4091_v33  ;;  %v3875_v42 = vld [vmem:[#allocation7 + $0x628] sm:$0xf0] }
 0x186   :  { %2691 = vmatpush.bf16.msra.mxu0 %v4046_v22  ;;  %2657 = vmatmul.bf16.vlgmr.msrb.gmra.mxu1 %v4772_v43  ;;  %v2737_v43 = vadd.f32 %v2736_v18, %v2735_v6  ;;  %v3731_v22 = vld [vmem:[#allocation7 + $0x508] sm:$0xf0]  ;;  %v3707_v6 = vld [vmem:[#allocation7 + $0x4d8] sm:$0xf0] }
 0x187   :  { %2705 = vmatpush.bf16.msra.mxu1 %v4238_v51  ;;  %2665 = vmatpush.bf16.msrb.mxu2 %v3614_v59  ;;  %v2367_v51 = vadd.f32 %v2366_v49, %v2353_v46  ;;  %v3734_v62 = vor.u32 %v4446_v14, %v3731_v22  ;;  %v4115_v18 = vld [vmem:[#allocation7 + $0x808] sm:$0xf0]  ;;  %v3710_v23 = vor.u32 %v4440_v5, %v3707_v6 }
 0x188   :  { %2679 = vmatpush.bf16.msrb.mxu3 %v3806_v2  ;;  %v4868_v50 = vsel %vm2827_vm12, %v2737_v43, %v2791_v11  ;;  %v3515_v2 = vld [vmem:[#allocation7 + $0x358] sm:$0xf0]  ;;  %v4118_v29 = vor.u32 %v4542_v17, %v4115_v18  ;;  %v4067_v46 = vld [vmem:[#allocation7 + $0x7a8] sm:$0xf0] }
 0x189   :  { %v2381_v59 = vadd.f32 %v2380_v57, %v2367_v51  ;;  %v3518_v16 = vor.u32 %v4392_v0, %v3515_v2  ;;  %v2394_v56 = vpop.f32.mrf.mxu2 }
 0x18a   :  { %2692 = vmatpush.bf16.msra.mxu0 %v4022_v13 }
 0x18b   :  { %2706 = vmatpush.bf16.msra.mxu1 %v4214_v15  ;;  %2666 = vmatpush.bf16.msrb.mxu2 %v3590_v21  ;;  %v2722_v10 = vpack.c.bf16 %v2381_v59, %v4847_v12  ;;  %v2738_v13 = vadd.f32 %v2381_v59, %v4859_v20  ;;  %v2780_v4 = vmul.f32 %v2381_v59, %v2381_v59  ;;  %v3923_v15 = vld [vmem:[#allocation7 + $0x688] sm:$0xf0]  ;;  %v4434_v12 = vld [vmem:[#allocation7 + $0x494] sm:$0xf] }
 0x18c   :  { %2680 = vmatpush.bf16.msrb.mxu3 %v3782_v54  ;;  %v3926_v26 = vor.u32 %v4494_v9, %v3923_v15  ;;  %v3683_v54 = vld [vmem:[#allocation7 + $0x4a8] sm:$0xf0] }
 0x18d   :  { %2728 = vst [vmem:[#allocation8 + $0x18] sm:$0xff] %v2722_v10  ;;  %v2739_v19 = vrot.slane %v2738_v13, 4  ;;  %v2792_v21 = vadd.f32 %v2780_v4, %v2774_v8  ;;  %v3686_v40 = vor.u32 %v4434_v12, %v3683_v54 }
 0x18e   :  { %2693 = vmatpush.bf16.msra.mxu0 %v3998_v37  ;;  %v3494_v37 = vor.u32 %v4386_v24, %v3491_v25 }
 0x18f   :  { %2707 = vmatpush.bf16.msra.mxu1 %v4190_v39  ;;  %2667 = vmatpush.bf16.msrb.mxu2 %v3566_v38  ;;  %v2740_v20 = vadd.f32 %v2739_v19, %v2738_v13  ;;  %v2793_v27 = vrot.slane %v2792_v21, 4  ;;  %v4482_v38 = vld [vmem:[#allocation7 + $0x614] sm:$0xf] }
 0x190   :  { %2681 = vmatpush.bf16.msrb.mxu3 %v3758_v61  ;;  %v3878_v48 = vor.u32 %v4482_v38, %v3875_v42 }
 0x191   :  { %v2741_v36 = vrot.slane %v2740_v20, 2  ;;  %v2794_v39 = vadd.f32 %v2793_v27, %v2792_v21 }
 0x192   :  { %2694 = vmatpush.bf16.msra.mxu0 %v3974_v63  ;;  %v4070_v63 = vor.u32 %v4530_v45, %v4067_v46 }
 0x193   :  { %2708 = vmatpush.bf16.msra.mxu1 %v4166_v52  ;;  %2668 = vmatpush.bf16.msrb.mxu2 %v3542_v58  ;;  %v2742_v43 = vadd.f32 %v2741_v36, %v2740_v20  ;;  %v2795_v11 = vrot.slane %v2794_v39, 2  ;;  %v2422_v58 = vpop.f32.mrf.mxu0 }
 0x194   :  { %2682 = vmatpush.bf16.msrb.mxu3 %v3734_v62 }
 0x195   :  { %v2743_v61 = vrot.slane %v2742_v43, 1  ;;  %v2796_v47 = vadd.f32 %v2795_v11, %v2794_v39 }
 0x196   :  { %2695 = vmatpush.bf16.msra.mxu0 %v3950_v44 }
 0x197   :  { %2709 = vmatpush.bf16.msra.mxu1 %v4142_v3  ;;  %2669 = vmatpush.bf16.msrb.mxu2 %v3518_v16  ;;  %v2797_v49 = vrot.slane %v2796_v47, 1  ;;  %v2744_v14 = vadd.f32 %v2743_v61, %v2742_v43 }
 0x198   :  { %2683 = vmatpush.bf16.msrb.mxu3 %v3710_v23 }
 0x199   :  { %v2798_v22 = vadd.f32 %v2797_v49, %v2796_v47 }
 0x19a   :  { %2696 = vmatpush.bf16.msra.mxu0 %v3926_v26 }
 0x19b   :  { %2710 = vmatpush.bf16.msra.mxu1 %v4118_v29  ;;  %2670 = vmatpush.bf16.msrb.mxu2 %v3494_v37  ;;  %v2829_v51 = vsel %vm2827_vm12, %v2744_v14, %v2798_v22 }
 0x19c   :  { %2684 = vmatpush.bf16.msrb.mxu3 %v3686_v40  ;;  %v2840_v52 = vrot.slane %v2829_v51, 6 }
 0x19e   :  { %2697 = vmatpush.bf16.msra.mxu0 %v3902_v60  ;;  %2671 = vmatmul.bf16.vlgmr.msrb.gmra.mxu2 %v4777_v1  ;;  %v4881_v53 = vsel %vm2844_vm13, %v4868_v50, %v2840_v52  ;;  %v2406_v1 = vpop.f32.mrf.mxu3 }
 0x19f   :  { %2711 = vmatpush.bf16.msra.mxu1 %v4094_v41  ;;  %2685 = vmatmul.bf16.vlgmr.msrb.gmra.mxu3 %v4779_v7  ;;  %v2434_v7 = vpop.f32.mrf.mxu1  ;;  %v2407_v2 = vadd.f32 %v2406_v1, %v2392_v35 }
 0x1a1   :  { %v2448_v62 = vpop.f32.mrf.mxu2  ;;  %v2421_v6 = vadd.f32 %v2420_v55, %v2407_v2 }
 0x1a2   :  { %2698 = vmatpush.bf16.msra.mxu0 %v3878_v48  ;;  %v2476_v3 = vpop.f32.mrf.mxu0 }
 0x1a3   :  { %2712 = vmatpush.bf16.msra.mxu1 %v4070_v63  ;;  %v2435_v10 = vadd.f32 %v2434_v7, %v2421_v6 }
 0x1a5   :  { %2699 = vmatmul.bf16.vlgmr.msra.gmra.mxu0 %v4793_v28  ;;  %v2449_v13 = vadd.f32 %v2448_v62, %v2435_v10 }
 0x1a6   :  { %2713 = vmatmul.bf16.vlgmr.msra.gmra.mxu1 %v4795_v34  ;;  %v2408_v57 = vpop.f32.mrf.mxu3 }
 0x1a7   :  { %v2436_v59 = vpop.f32.mrf.mxu1  ;;  %v2409_v0 = vadd.f32 %v2408_v57, %v2394_v56 }
 0x1a9   :  { %v2423_v5 = vadd.f32 %v2422_v58, %v2409_v0  ;;  %v2450_v34 = vpop.f32.mrf.mxu2 }
 0x1aa   :  { %v2478_v9 = vpop.f32.mrf.mxu0 }
 0x1ab   :  { %v2437_v8 = vadd.f32 %v2436_v59, %v2423_v5 }
 0x1ad   :  { %v2451_v50 = vadd.f32 %v2450_v34, %v2437_v8 }
 0x1ae   :  { %v2462_v44 = vpop.f32.mrf.mxu3 }
 0x1af   :  { %v2490_v28 = vpop.f32.mrf.mxu1  ;;  %v2463_v17 = vadd.f32 %v2462_v44, %v2449_v13 }
 0x1b0   :  { %v2491_v18 = vadd.f32 %v2490_v28, %v2476_v3 }
 0x1b1   :  { %v2775_v23 = vmul.f32 %v2463_v17, %v2463_v17 }
 0x1b6   :  { %v2464_v4 = vpop.f32.mrf.mxu3 }
 0x1b7   :  { %v2465_v15 = vadd.f32 %v2464_v4, %v2451_v50  ;;  %v2492_v16 = vpop.f32.mrf.mxu1 }
 0x1b8   :  { %v2493_v31 = vadd.f32 %v2492_v16, %v2478_v9 }
 0x1b9   :  { %v2781_v19 = vmul.f32 %v2465_v15, %v2465_v15  ;;  %v2745_v20 = vadd.f32 %v2465_v15, %v2463_v17 }
 0x1bb   :  { %v2799_v12 = vadd.f32 %v2781_v19, %v2775_v23  ;;  %v2746_v32 = vrot.slane %v2745_v20, 4 }
 0x1bd   :  { %v2800_v30 = vrot.slane %v2799_v12, 4  ;;  %v2747_v11 = vadd.f32 %v2746_v32, %v2745_v20 }
 0x1bf   :  { %v2801_v60 = vadd.f32 %v2800_v30, %v2799_v12  ;;  %v2748_v61 = vrot.slane %v2747_v11, 2 }
 0x1c1   :  { %v2504_v21 = vpop.f32.mrf.mxu2  ;;  %v2802_v45 = vrot.slane %v2801_v60, 2  ;;  %v2749_v51 = vadd.f32 %v2748_v61, %v2747_v11 }
 0x1c2   :  { %v2505_v24 = vadd.f32 %v2504_v21, %v2491_v18  ;;  %v2532_v26 = vpop.f32.mrf.mxu0 }
 0x1c3   :  { %v2546_v27 = vpop.f32.mrf.mxu1  ;;  %v2803_v14 = vadd.f32 %v2802_v45, %v2801_v60  ;;  %v2750_v57 = vrot.slane %v2749_v51, 1 }
 0x1c4   :  { %v2518_v25 = vpop.f32.mrf.mxu3 }
 0x1c5   :  { %v2519_v54 = vadd.f32 %v2518_v25, %v2505_v24  ;;  %v2804_v55 = vrot.slane %v2803_v14, 1  ;;  %v2751_v44 = vadd.f32 %v2750_v57, %v2749_v51 }
 0x1c7   :  { %v2533_v29 = vadd.f32 %v2532_v26, %v2519_v54  ;;  %v2805_v62 = vadd.f32 %v2804_v55, %v2803_v14 }
 0x1c9   :  { %v2547_v37 = vadd.f32 %v2546_v27, %v2533_v29  ;;  %v2506_v33 = vpop.f32.mrf.mxu2  ;;  %v2830_v6 = vsel %vm2827_vm12, %v2751_v44, %v2805_v62 }
 0x1ca   :  { %v2507_v39 = vadd.f32 %v2506_v33, %v2493_v31  ;;  %v2534_v41 = vpop.f32.mrf.mxu0  ;;  %v2841_v8 = vrot.slane %v2830_v6, 4 }
 0x1cb   :  { %v2720_v36 = vpack.c.bf16 %v2547_v37, %v2463_v17  ;;  %v2548_v42 = vpop.f32.mrf.mxu1  ;;  %v2776_v47 = vmul.f32 %v2547_v37, %v2547_v37 }
 0x1cc   :  { %v2520_v40 = vpop.f32.mrf.mxu3 }
 0x1cd   :  { %2726 = vst [vmem:[#allocation8 + $0x8] sm:$0xff] %v2720_v36  ;;  %v2521_v43 = vadd.f32 %v2520_v40, %v2507_v39 }
 0x1cf   :  { %v2535_v38 = vadd.f32 %v2534_v41, %v2521_v43 }
 0x1d1   :  { %v2549_v46 = vadd.f32 %v2548_v42, %v2535_v38 }
 0x1d3   :  { %v2723_v48 = vpack.c.bf16 %v2549_v46, %v2465_v15  ;;  %v2752_v49 = vadd.f32 %v2549_v46, %v2547_v37  ;;  %v2782_v63 = vmul.f32 %v2549_v46, %v2549_v46 }
 0x1d5   :  { %2729 = vst [vmem:[#allocation8 + $0x20] sm:$0xff] %v2723_v48  ;;  %v2753_v22 = vrot.slane %v2752_v49, 4  ;;  %v2806_v35 = vadd.f32 %v2782_v63, %v2776_v47 }
 0x1d7   :  { %v2754_v52 = vadd.f32 %v2753_v22, %v2752_v49  ;;  %v2807_v1 = vrot.slane %v2806_v35, 4 }
 0x1d9   :  { %v2755_v7 = vrot.slane %v2754_v52, 2  ;;  %v2808_v56 = vadd.f32 %v2807_v1, %v2806_v35 }
 0x1db   :  { %v2756_v58 = vadd.f32 %v2755_v7, %v2754_v52  ;;  %v2809_v59 = vrot.slane %v2808_v56, 2 }
 0x1dd   :  { %v2757_v0 = vrot.slane %v2756_v58, 1  ;;  %v2810_v2 = vadd.f32 %v2809_v59, %v2808_v56 }
 0x1df   :  { %v2811_v3 = vrot.slane %v2810_v2, 1  ;;  %v2758_v5 = vadd.f32 %v2757_v0, %v2756_v58 }
 0x1e1   :  { %v2812_v28 = vadd.f32 %v2811_v3, %v2810_v2  ;;  %v2560_v4 = vpop.f32.mrf.mxu2 }
 0x1e2   :  { %v2588_v15 = vpop.f32.mrf.mxu0 }
 0x1e3   :  { %v2831_v34 = vsel %vm2827_vm12, %v2758_v5, %v2812_v28  ;;  %v2602_v16 = vpop.f32.mrf.mxu1 }
 0x1e4   :  { %v2842_v10 = vrot.slane %v2831_v34, 2  ;;  %v2574_v9 = vpop.f32.mrf.mxu3 }
 0x1e5   :  { %v2575_v54 = vadd.f32 %v2574_v9, %v2560_v4 }
 0x1e6   :  { %v2847_v50 = vsel %vm2846_vm14, %v2841_v8, %v2842_v10 }
 0x1e7   :  { %v2849_v13 = vsel %vm2848_vm15, %v4881_v53, %v2847_v50  ;;  %v2589_v27 = vadd.f32 %v2588_v15, %v2575_v54 }
 0x1e8   :  { %2853 = vst [vmem:[#allocation9] sm:$0xff] %v2849_v13 }
 0x1e9   :  { %v2562_v17 = vpop.f32.mrf.mxu2  ;;  %v2603_v37 = vadd.f32 %v2602_v16, %v2589_v27 }
 0x1ea   :  { %v2590_v19 = vpop.f32.mrf.mxu0 }
 0x1eb   :  { %v2604_v21 = vpop.f32.mrf.mxu1 }
 0x1ec   :  { %v2576_v18 = vpop.f32.mrf.mxu3 }
 0x1ed   :  { %v2577_v26 = vadd.f32 %v2576_v18, %v2562_v17 }
 0x1ef   :  { %v2591_v20 = vadd.f32 %v2590_v19, %v2577_v26 }
 0x1f1   :  { %v2605_v30 = vadd.f32 %v2604_v21, %v2591_v20 }
 0x201   :  { %v2616_v23 = vpop.f32.mrf.mxu2 }
 0x202   :  { %v2644_v25 = vpop.f32.mrf.mxu0  ;;  %v2617_v36 = vadd.f32 %v2616_v23, %v2603_v37 }
 0x203   :  { %v2658_v12 = vpop.f32.mrf.mxu1 }
 0x204   :  { %v2630_v24 = vpop.f32.mrf.mxu3  ;;  %v2659_v39 = vadd.f32 %v2658_v12, %v2644_v25 }
 0x205   :  { %v2631_v43 = vadd.f32 %v2630_v24, %v2617_v36 }
 0x207   :  { %v2777_v61 = vmul.f32 %v2631_v43, %v2631_v43 }
 0x209   :  { %v2618_v29 = vpop.f32.mrf.mxu2 }
 0x20a   :  { %v2646_v31 = vpop.f32.mrf.mxu0  ;;  %v2619_v32 = vadd.f32 %v2618_v29, %v2605_v30 }
 0x20b   :  { %v2660_v33 = vpop.f32.mrf.mxu1 }
 0x20c   :  { %v2632_v53 = vpop.f32.mrf.mxu3  ;;  %v2661_v49 = vadd.f32 %v2660_v33, %v2646_v31 }
 0x20d   :  { %v2633_v40 = vadd.f32 %v2632_v53, %v2619_v32 }
 0x20f   :  { %v2783_v42 = vmul.f32 %v2633_v40, %v2633_v40  ;;  %v2759_v14 = vadd.f32 %v2633_v40, %v2631_v43 }
 0x211   :  { %v2813_v48 = vadd.f32 %v2783_v42, %v2777_v61  ;;  %v2760_v7 = vrot.slane %v2759_v14, 4 }
 0x213   :  { %v2814_v1 = vrot.slane %v2813_v48, 4  ;;  %v2761_v0 = vadd.f32 %v2760_v7, %v2759_v14 }
 0x215   :  { %v2815_v59 = vadd.f32 %v2814_v1, %v2813_v48  ;;  %v2762_v8 = vrot.slane %v2761_v0, 2 }
 0x217   :  { %v2816_v28 = vrot.slane %v2815_v59, 2  ;;  %v2763_v15 = vadd.f32 %v2762_v8, %v2761_v0 }
 0x219   :  { %v2817_v13 = vadd.f32 %v2816_v28, %v2815_v59  ;;  %v2764_v23 = vrot.slane %v2763_v15, 1 }
 0x21b   :  { %v2818_v18 = vrot.slane %v2817_v13, 1  ;;  %v2765_v54 = vadd.f32 %v2764_v23, %v2763_v15 }
 0x21d   :  { %v2819_v25 = vadd.f32 %v2818_v18, %v2817_v13 }
 0x21f   :  { %v2832_v29 = vsel %vm2827_vm12, %v2765_v54, %v2819_v25 }
 0x221   :  { %v2672_v60 = vpop.f32.mrf.mxu2 }
 0x222   :  { %v2673_v11 = vadd.f32 %v2672_v60, %v2659_v39  ;;  %v2686_v41 = vpop.f32.mrf.mxu3  ;;  %v2700_v38 = vpop.f32.mrf.mxu0 }
 0x223   :  { %v2714_v46 = vpop.f32.mrf.mxu1 }
 0x224   :  { %v2687_v45 = vadd.f32 %v2686_v41, %v2673_v11 }
 0x226   :  { %v2701_v47 = vadd.f32 %v2700_v38, %v2687_v45 }
 0x228   :  { %v2715_v63 = vadd.f32 %v2714_v46, %v2701_v47 }
 0x229   :  { %v2674_v22 = vpop.f32.mrf.mxu2 }
 0x22a   :  { %v2721_v35 = vpack.c.bf16 %v2715_v63, %v2631_v43  ;;  %v2675_v51 = vadd.f32 %v2674_v22, %v2661_v49  ;;  %v2688_v52 = vpop.f32.mrf.mxu3  ;;  %v2702_v56 = vpop.f32.mrf.mxu0  ;;  %v2778_v2 = vmul.f32 %v2715_v63, %v2715_v63 }
 0x22b   :  { %v2716_v58 = vpop.f32.mrf.mxu1 }
 0x22c   :  { %2727 = vst [vmem:[#allocation8 + $0x10] sm:$0xff] %v2721_v35  ;;  %v2689_v55 = vadd.f32 %v2688_v52, %v2675_v51 }
 0x22e   :  { %v2703_v57 = vadd.f32 %v2702_v56, %v2689_v55 }
 0x230   :  { %v2717_v62 = vadd.f32 %v2716_v58, %v2703_v57 }
 0x232   :  { %v2724_v44 = vpack.c.bf16 %v2717_v62, %v2633_v40  ;;  %v2766_v3 = vadd.f32 %v2717_v62, %v2715_v63  ;;  %v2784_v5 = vmul.f32 %v2717_v62, %v2717_v62 }
 0x234   :  { %2730 = vst [vmem:[#allocation8 + $0x28] sm:$0xff] %v2724_v44  ;;  %v2767_v6 = vrot.slane %v2766_v3, 4  ;;  %v2820_v34 = vadd.f32 %v2784_v5, %v2778_v2 }
 0x235   :  { %2867 = dma.vmem_to_hbm [thread:$0]  %s2860_s6, 768, %s2862_s9, [#allocation4], %s4714_s23, %s4714_s23, %s4715_s24  }
 0x236   :  { %v2768_v10 = vadd.f32 %v2767_v6, %v2766_v3  ;;  %v2821_v50 = vrot.slane %v2820_v34, 4 }
 0x238   :  { %v2769_v4 = vrot.slane %v2768_v10, 2  ;;  %v2822_v9 = vadd.f32 %v2821_v50, %v2820_v34 }
 0x23a   :  { %v2770_v16 = vadd.f32 %v2769_v4, %v2768_v10  ;;  %v2823_v17 = vrot.slane %v2822_v9, 2 }
 0x23c   :  { %v2771_v19 = vrot.slane %v2770_v16, 1  ;;  %v2824_v21 = vadd.f32 %v2823_v17, %v2822_v9 }
 0x23e   :  { %v2825_v24 = vrot.slane %v2824_v21, 1  ;;  %v2772_v26 = vadd.f32 %v2771_v19, %v2770_v16 }
 0x240   :  { %v2826_v12 = vadd.f32 %v2825_v24, %v2824_v21 }
 0x242   :  { %v2833_v20 = vsel %vm2827_vm12, %v2772_v26, %v2826_v12 }
 0x243   :  { %v2843_v27 = vrot.slane %v2833_v20, 6 }
 0x245   :  { %v2850_v30 = vsel %vm2844_vm13, %v2832_v29, %v2843_v27 }
 0x246   :  { %2854 = vst [vmem:[#allocation9 + $0x8] sm:$0xf] %v2850_v30 }
 0x247   :  { %2878 = dma.vmem_to_hbm [thread:$0]  %s2874_s10, 192, %s2876_s13, [#allocation10]  }
 0x248   :  { %4709 = dma.done.wait [#allocation4], 768  }
 0x249   :  { %4710 = vsyncadd [#allocation4], 4294966528 }
 0x24a   :  { %4711 = dma.done.wait [#allocation10], 192  }
 0x24b   :  { %4712 = vsyncadd [#allocation10], 4294967104 }
 0x24c   :  { %2887 = vsyncpa [#allocation3], 1 }
 0x24d   :  { %2888 = vsyncpa [#allocation6], 1 }
 0x24e   :  { %2889 = vsyncpa [#allocation4], 1 }
 0x24f   :  { %2890 = vsyncpa [#allocation10], 1 }

</bundles_post_ra>
